<compile_context>
chip_gen: v7x
topology: tpu7x:2x2x1
jax: 0.10.0
libtpu: 0.0.40
codegen_flags: <defaults>
</compile_context>

<pallas_src>
import math

import numpy as np
import jax
import jax.numpy as jnp
from jax.experimental import pallas as pl
from jax.experimental.pallas import tpu as pltpu


# ----------------------------- fused Pallas kernel ---------------------------

def _make_fused_kernel(T, B, H):
    """Build the fused 3-layer LSTM + FC kernel for static (T, B, H).

    Ref layout (all full-array VMEM blocks, no grid):
      x_ref:     (T*B, D_in)  t-major input  (row t*B+b == x[b, t, :])
      wih{l}:    (D_l, 4H)    input->gates weight (transposed, i/f/o cols * 0.5)
      whh{l}:    (H,   4H)    hidden->gates weight (transposed, i/f/o cols * 0.5)
      b{l}:      (1,   4H)    combined bias (b_ih + b_hh, i/f/o cols * 0.5)
      wfc:       (H, O), bfc: (1, O)
      out_ref:   (B, O)
      gx_sc:     (T*B, 4H)    VMEM scratch for the hoisted layer-1 projection
    """
    f32 = jnp.float32

    def kernel(x_ref,
               wih1_ref, whh1_ref, b1_ref,
               wih2_ref, whh2_ref, b2_ref,
               wih3_ref, whh3_ref, b3_ref,
               wfc_ref, bfc_ref,
               out_ref, gx_sc):
        # Hoisted layer-1 input projection: one bulk matmul, off the serial chain.
        gx_sc[...] = jnp.dot(x_ref[...], wih1_ref[...],
                             preferred_element_type=f32) + b1_ref[...]

        # g-gate lane mask, hoisted out of the unrolled wavefront loop. (B, 4H)
        lane = jax.lax.broadcasted_iota(jnp.int32, (B, 4 * H), 1)
        g_mask = (lane >= 2 * H) & (lane < 3 * H)

        def cell_update(gates, c):
            # i/f/o columns of W and b were pre-scaled by 0.5, so a single
            # full-width tanh yields all gates: sigmoid(x) = 0.5 + 0.5*tanh(x/2).
            t = jnp.tanh(gates)
            act = jnp.where(g_mask, t, 0.5 * t + 0.5)
            i_g = act[:, 0 * H:1 * H]
            f_g = act[:, 1 * H:2 * H]
            g_g = act[:, 2 * H:3 * H]
            o_g = act[:, 3 * H:4 * H]
            c_new = f_g * c + i_g * g_g
            h_new = o_g * jnp.tanh(c_new)
            return h_new, c_new

        zeros = jnp.zeros((B, H), f32)
        h1, c1 = zeros, zeros
        h2, c2 = zeros, zeros
        h3, c3 = zeros, zeros

        whh1 = whh1_ref[...]
        wih2, whh2, b2 = wih2_ref[...], whh2_ref[...], b2_ref[...]
        wih3, whh3, b3 = wih3_ref[...], whh3_ref[...], b3_ref[...]

        # Layer/time wavefront: step s computes layer1@t=s, layer2@t=s-1,
        # layer3@t=s-2.  Every matmul below reads only h's from step s-1, so all
        # pushes in a step are independent and pipeline on the MXU.
        for s in range(T + 2):          # T is small and static: fully unrolled
            l1 = s < T
            l2 = 1 <= s <= T
            l3 = 2 <= s <= T + 1

            # ---- issue all active gate matmuls before consuming any result ----
            if l1:
                g1 = gx_sc[s * B:(s + 1) * B, :] + jnp.dot(
                    h1, whh1, preferred_element_type=f32)
            if l2:
                g2 = (jnp.dot(h1, wih2, preferred_element_type=f32)
                      + jnp.dot(h2, whh2, preferred_element_type=f32) + b2)
            if l3:
                g3 = (jnp.dot(h2, wih3, preferred_element_type=f32)
                      + jnp.dot(h3, whh3, preferred_element_type=f32) + b3)

            # ---- cell updates (all gates above read the pre-update h's) ----
            if l3:
                h3, c3 = cell_update(g3, c3)
            if l2:
                h2, c2 = cell_update(g2, c2)
            if l1:
                h1, c1 = cell_update(g1, c1)

        # ---- ReLU on the last timestep of layer 3 + final Linear ----
        h_relu = jnp.maximum(h3, 0.0)
        out_ref[...] = (jnp.dot(h_relu, wfc_ref[...],
                                preferred_element_type=f32)
                        + bfc_ref[...]).astype(out_ref.dtype)

    return kernel


# ----------------------------- wrapper ---------------------------------------

@jax.jit
def lstm_model_forward(x_btd, kp):
    """Forward pass of LSTMModel. x_btd: (B, T, input_size), batch_first like PyTorch.

    kp: kernel-ready params from prepare_params() (layer-3/fc padded, gates pre-scaled).
    """
    B, T, D = x_btd.shape
    H = kp["lstm1"]["w_hh"].shape[0]
    O = kp["fc"]["w"].shape[1]

    # Pad batch to full sublanes (zero rows are sliced away afterwards).
    B_pad = max(8, ((B + 7) // 8) * 8)
    x_p = jnp.zeros((B_pad, T, D), jnp.float32).at[:B].set(x_btd)
    # Cheap layout plumbing: present the input t-major as (T*B_pad, D) so every
    # timestep is one sublane-aligned row block inside the kernel.
    x_prep = jnp.transpose(x_p, (1, 0, 2)).reshape(T * B_pad, D)

    full2d = lambda shape: pl.BlockSpec(shape, lambda: (0, 0))

    out = pl.pallas_call(
        _make_fused_kernel(T, B_pad, H),
        out_shape=jax.ShapeDtypeStruct((B_pad, O), jnp.float32),
        in_specs=[
            full2d((T * B_pad, D)),
            full2d((D, 4 * H)), full2d((H, 4 * H)), full2d((1, 4 * H)),
            full2d((H, 4 * H)), full2d((H, 4 * H)), full2d((1, 4 * H)),
            full2d((H, 4 * H)), full2d((H, 4 * H)), full2d((1, 4 * H)),
            full2d((H, O)), full2d((1, O)),
        ],
        out_specs=full2d((B_pad, O)),
        scratch_shapes=[pltpu.VMEM((T * B_pad, 4 * H), jnp.float32)],
        # TODO(synk): if the padded batch grows to >=16, add a batch grid axis
        # marked "parallel" so v7x's second TensorCore gets >=8 sublanes of work;
        # at B_pad=8 a split only adds grid overhead.
    )(
        x_prep,
        kp["lstm1"]["w_ih"], kp["lstm1"]["w_hh"], kp["lstm1"]["b"],
        kp["lstm2"]["w_ih"], kp["lstm2"]["w_hh"], kp["lstm2"]["b"],
        kp["lstm3"]["w_ih"], kp["lstm3"]["w_hh"], kp["lstm3"]["b"],
        kp["fc"]["w"], kp["fc"]["b"],
    )
    return out[:B]


# ----------------------------- parameter init / prep --------------------------

def init_lstm_params(key, input_size, hidden_size):
    """Mimic PyTorch nn.LSTM init: U(-1/sqrt(H), 1/sqrt(H)); gate order i,f,g,o."""
    k = 1.0 / math.sqrt(hidden_size)
    k1, k2, k3, k4 = jax.random.split(key, 4)
    # Stored transposed relative to PyTorch: (D_in, 4H) / (H, 4H).
    w_ih = jax.random.uniform(k1, (input_size, 4 * hidden_size), jnp.float32, -k, k)
    w_hh = jax.random.uniform(k2, (hidden_size, 4 * hidden_size), jnp.float32, -k, k)
    b_ih = jax.random.uniform(k3, (4 * hidden_size,), jnp.float32, -k, k)
    b_hh = jax.random.uniform(k4, (4 * hidden_size,), jnp.float32, -k, k)
    return {"w_ih": w_ih, "w_hh": w_hh, "b": (b_ih + b_hh)[None, :]}


def init_params(key, input_size, hidden_size, output_size):
    k1, k2, k3, k4 = jax.random.split(key, 4)
    params = {
        "lstm1": init_lstm_params(k1, input_size, hidden_size),
        "lstm2": init_lstm_params(k2, hidden_size, hidden_size),
        "lstm3": init_lstm_params(k3, hidden_size, 20),
    }
    kf = 1.0 / math.sqrt(20)
    kw, kb = jax.random.split(k4)
    params["fc"] = {
        "w": jax.random.uniform(kw, (20, output_size), jnp.float32, -kf, kf),
        "b": jax.random.uniform(kb, (1, output_size), jnp.float32, -kf, kf),
    }
    return params


def _pad_gate_cols(w, h_real, h_pad):
    """(rows, 4*h_real) -> (rows, 4*h_pad): zero-pad each gate block on the right."""
    rows = w.shape[0]
    w4 = w.reshape(rows, 4, h_real)
    w4p = jnp.zeros((rows, 4, h_pad), w.dtype).at[:, :, :h_real].set(w4)
    return w4p.reshape(rows, 4 * h_pad)


def _gate_scale(h_pad):
    """Column scale: 0.5 for i/f/o gate blocks, 1.0 for the g block."""
    s = jnp.full((4 * h_pad,), 0.5, jnp.float32)
    return s.at[2 * h_pad:3 * h_pad].set(1.0)[None, :]


def prepare_params(params):
    """One-time, outside the forward pass:
      * pad layer-3 hidden 20 -> hidden_size and fc rows to match (lane alignment);
      * pre-scale i/f/o gate columns of every W_ih/W_hh/b by 0.5 so the kernel
        needs a single tanh per cell (sigmoid(x) = 0.5 + 0.5*tanh(x/2)).
    Padding is exact: padded hidden units have zero gate pre-activations forever
    (zero bias, zero recurrent columns), so their h stays 0; padded fc rows are 0.
    """
    H = params["lstm1"]["w_hh"].shape[0]          # hidden_size (32)
    H3 = params["lstm3"]["w_hh"].shape[0]         # 20
    scale = _gate_scale(H)

    def scaled(layer):
        return {"w_ih": layer["w_ih"] * scale,
                "w_hh": layer["w_hh"] * scale,
                "b": layer["b"] * scale}

    kp = {"lstm1": scaled(params["lstm1"]), "lstm2": scaled(params["lstm2"])}

    p3 = params["lstm3"]
    w_ih3 = _pad_gate_cols(p3["w_ih"], H3, H)                         # (H, 4H)
    w_hh3 = _pad_gate_cols(p3["w_hh"], H3, H)                         # (H3, 4H)
    w_hh3 = jnp.zeros((H, 4 * H), w_hh3.dtype).at[:H3].set(w_hh3)     # (H, 4H)
    b3 = _pad_gate_cols(p3["b"], H3, H)                               # (1, 4H)
    kp["lstm3"] = scaled({"w_ih": w_ih3, "w_hh": w_hh3, "b": b3})

    wfc = params["fc"]["w"]                                           # (20, O)
    wfc_p = jnp.zeros((H, wfc.shape[1]), wfc.dtype).at[:H3].set(wfc)  # (H, O)
    kp["fc"] = {"w": wfc_p, "b": params["fc"]["b"]}
    return kp


# ----------------------------- reference (pure JAX) ---------------------------

def _lstm_ref(x_btd, p):
    B = x_btd.shape[0]
    H = p["w_hh"].shape[0]

    def step(carry, x_t):
        h, c = carry
        gates = x_t @ p["w_ih"] + h @ p["w_hh"] + p["b"]
        i = jax.nn.sigmoid(gates[:, 0 * H:1 * H])
        f = jax.nn.sigmoid(gates[:, 1 * H:2 * H])
        g = jnp.tanh(gates[:, 2 * H:3 * H])
        o = jax.nn.sigmoid(gates[:, 3 * H:4 * H])
        c = f * c + i * g
        h = o * jnp.tanh(c)
        return (h, c), h

    init = (jnp.zeros((B, H), jnp.float32), jnp.zeros((B, H), jnp.float32))
    _, hs = jax.lax.scan(step, init, jnp.transpose(x_btd, (1, 0, 2)))
    return jnp.transpose(hs, (1, 0, 2))


def model_ref(x_btd, params):
    x = x_btd
    for layer in ("lstm1", "lstm2", "lstm3"):
        x = _lstm_ref(x, params[layer])
    h = jnp.maximum(x[:, -1, :], 0.0)
    return h @ params["fc"]["w"] + params["fc"]["b"]


# ----------------------------- main -------------------------------------------

if __name__ == "__main__":
    B, T = 4, 8
    input_size, hidden_size, output_size = 8, 32, 4

    key = jax.random.PRNGKey(0)
    kx, kp = jax.random.split(key)
    x = jax.random.normal(kx, (B, T, input_size), jnp.float32)
    params = init_params(kp, input_size, hidden_size, output_size)
    kparams = prepare_params(params)          # one-time padding / scaling / layout prep

    out = jax.block_until_ready(lstm_model_forward(x, kparams))
    ref = jax.block_until_ready(model_ref(x, params))

    assert out.shape == (B, output_size)
    np.testing.assert_allclose(np.asarray(out), np.asarray(ref), rtol=1e-4, atol=1e-4)

    print("KERNEL_OK")
</pallas_src>

<mosaic_0001>
module attributes {stable_mosaic.version = 11 : i64} {
  func.func @kernel(%arg0: memref<64x8xf32, #tpu.memory_space<vmem>>, %arg1: memref<8x128xf32, #tpu.memory_space<vmem>>, %arg2: memref<32x128xf32, #tpu.memory_space<vmem>>, %arg3: memref<1x128xf32, #tpu.memory_space<vmem>>, %arg4: memref<32x128xf32, #tpu.memory_space<vmem>>, %arg5: memref<32x128xf32, #tpu.memory_space<vmem>>, %arg6: memref<1x128xf32, #tpu.memory_space<vmem>>, %arg7: memref<32x128xf32, #tpu.memory_space<vmem>>, %arg8: memref<32x128xf32, #tpu.memory_space<vmem>>, %arg9: memref<1x128xf32, #tpu.memory_space<vmem>>, %arg10: memref<32x4xf32, #tpu.memory_space<vmem>>, %arg11: memref<1x4xf32, #tpu.memory_space<vmem>>, %arg12: memref<8x4xf32, #tpu.memory_space<vmem>>, %arg13: memref<64x128xf32, #tpu.memory_space<vmem>>) attributes {dimension_semantics = [], scalar_prefetch = 0 : i64, scratch_operands = 1 : i64, tpu.core_type = #tpu.core_type<tc>} {
    %c0 = arith.constant 0 : index
    %c0_0 = arith.constant 0 : index
    %0 = vector.load %arg0[%c0, %c0_0] : memref<64x8xf32, #tpu.memory_space<vmem>>, vector<64x8xf32>
    %c0_1 = arith.constant 0 : index
    %c0_2 = arith.constant 0 : index
    %1 = vector.load %arg1[%c0_1, %c0_2] : memref<8x128xf32, #tpu.memory_space<vmem>>, vector<8x128xf32>
    %cst = arith.constant dense<0.000000e+00> : vector<64x128xf32>
    %2 = tpu.matmul %0, %1, %cst {dimension_numbers = #tpu.dot_dimension_numbers<[1], [0], [0], [1], [0, 0, 1, 1], [], []>} : vector<64x8xf32>, vector<8x128xf32>, vector<64x128xf32> -> vector<64x128xf32>
    %c0_3 = arith.constant 0 : index
    %c0_4 = arith.constant 0 : index
    %3 = vector.load %arg3[%c0_3, %c0_4] : memref<1x128xf32, #tpu.memory_space<vmem>>, vector<1x128xf32>
    %4 = vector.broadcast %3 : vector<1x128xf32> to vector<64x128xf32>
    %5 = arith.addf %2, %4 : vector<64x128xf32>
    %c0_5 = arith.constant 0 : index
    %c0_6 = arith.constant 0 : index
    %6 = vector.load %arg13[%c0_5, %c0_6] : memref<64x128xf32, #tpu.memory_space<vmem>>, vector<64x128xf32>
    tpu.vector_store %arg13[%c0_5, %c0_6], %5 {strides = array<i32>} : memref<64x128xf32, #tpu.memory_space<vmem>>, vector<64x128xf32>,
    %7 = tpu.iota {dimensions = array<i32: 1>} : vector<8x128xi32>
    %c64_i32 = arith.constant 64 : i32
    %8 = vector.broadcast %c64_i32 : i32 to vector<8x128xi32>
    %9 = arith.cmpi sge, %7, %8 : vector<8x128xi32>
    %c96_i32 = arith.constant 96 : i32
    %10 = vector.broadcast %c96_i32 : i32 to vector<8x128xi32>
    %11 = arith.cmpi slt, %7, %10 : vector<8x128xi32>
    %12 = arith.andi %9, %11 : vector<8x128xi1>
    %cst_7 = arith.constant 0.000000e+00 : f32
    %13 = vector.broadcast %cst_7 : f32 to vector<8x32xf32>
    %c0_8 = arith.constant 0 : index
    %c0_9 = arith.constant 0 : index
    %14 = vector.load %arg2[%c0_8, %c0_9] : memref<32x128xf32, #tpu.memory_space<vmem>>, vector<32x128xf32>
    %c0_10 = arith.constant 0 : index
    %c0_11 = arith.constant 0 : index
    %15 = vector.load %arg4[%c0_10, %c0_11] : memref<32x128xf32, #tpu.memory_space<vmem>>, vector<32x128xf32>
    %c0_12 = arith.constant 0 : index
    %c0_13 = arith.constant 0 : index
    %16 = vector.load %arg5[%c0_12, %c0_13] : memref<32x128xf32, #tpu.memory_space<vmem>>, vector<32x128xf32>
    %c0_14 = arith.constant 0 : index
    %c0_15 = arith.constant 0 : index
    %17 = vector.load %arg6[%c0_14, %c0_15] : memref<1x128xf32, #tpu.memory_space<vmem>>, vector<1x128xf32>
    %c0_16 = arith.constant 0 : index
    %c0_17 = arith.constant 0 : index
    %18 = vector.load %arg7[%c0_16, %c0_17] : memref<32x128xf32, #tpu.memory_space<vmem>>, vector<32x128xf32>
    %c0_18 = arith.constant 0 : index
    %c0_19 = arith.constant 0 : index
    %19 = vector.load %arg8[%c0_18, %c0_19] : memref<32x128xf32, #tpu.memory_space<vmem>>, vector<32x128xf32>
    %c0_20 = arith.constant 0 : index
    %c0_21 = arith.constant 0 : index
    %20 = vector.load %arg9[%c0_20, %c0_21] : memref<1x128xf32, #tpu.memory_space<vmem>>, vector<1x128xf32>
    %c0_22 = arith.constant 0 : index
    %c0_23 = arith.constant 0 : index
    %21 = vector.load %arg13[%c0_22, %c0_23] : memref<64x128xf32, #tpu.memory_space<vmem>>, vector<8x128xf32>
    %cst_24 = arith.constant dense<0.000000e+00> : vector<8x128xf32>
    %22 = tpu.matmul %13, %14, %cst_24 {dimension_numbers = #tpu.dot_dimension_numbers<[1], [0], [0], [1], [0, 0, 1, 1], [], []>} : vector<8x32xf32>, vector<32x128xf32>, vector<8x128xf32> -> vector<8x128xf32>
    %23 = arith.addf %21, %22 : vector<8x128xf32>
    %24 = math.tanh %23 : vector<8x128xf32>
    %cst_25 = arith.constant 5.000000e-01 : f32
    %25 = vector.broadcast %cst_25 : f32 to vector<8x128xf32>
    %26 = arith.mulf %25, %24 : vector<8x128xf32>
    %cst_26 = arith.constant 5.000000e-01 : f32
    %27 = vector.broadcast %cst_26 : f32 to vector<8x128xf32>
    %28 = arith.addf %26, %27 : vector<8x128xf32>
    %29 = arith.select %12, %24, %28 : vector<8x128xi1>, vector<8x128xf32>
    %30 = vector.extract_strided_slice %29 {offsets = [0, 0], sizes = [8, 32], strides = [1, 1]} : vector<8x128xf32> to vector<8x32xf32>
    %31 = vector.extract_strided_slice %29 {offsets = [0, 32], sizes = [8, 32], strides = [1, 1]} : vector<8x128xf32> to vector<8x32xf32>
    %32 = vector.extract_strided_slice %29 {offsets = [0, 64], sizes = [8, 32], strides = [1, 1]} : vector<8x128xf32> to vector<8x32xf32>
    %33 = vector.extract_strided_slice %29 {offsets = [0, 96], sizes = [8, 32], strides = [1, 1]} : vector<8x128xf32> to vector<8x32xf32>
    %34 = arith.mulf %31, %13 : vector<8x32xf32>
    %35 = arith.mulf %30, %32 : vector<8x32xf32>
    %36 = arith.addf %34, %35 : vector<8x32xf32>
    %37 = math.tanh %36 : vector<8x32xf32>
    %38 = arith.mulf %33, %37 : vector<8x32xf32>
    %c8 = arith.constant 8 : index
    %c0_27 = arith.constant 0 : index
    %39 = vector.load %arg13[%c8, %c0_27] : memref<64x128xf32, #tpu.memory_space<vmem>>, vector<8x128xf32>
    %cst_28 = arith.constant dense<0.000000e+00> : vector<8x128xf32>
    %40 = tpu.matmul %38, %14, %cst_28 {dimension_numbers = #tpu.dot_dimension_numbers<[1], [0], [0], [1], [0, 0, 1, 1], [], []>} : vector<8x32xf32>, vector<32x128xf32>, vector<8x128xf32> -> vector<8x128xf32>
    %41 = arith.addf %39, %40 : vector<8x128xf32>
    %cst_29 = arith.constant dense<0.000000e+00> : vector<8x128xf32>
    %42 = tpu.matmul %38, %15, %cst_29 {dimension_numbers = #tpu.dot_dimension_numbers<[1], [0], [0], [1], [0, 0, 1, 1], [], []>} : vector<8x32xf32>, vector<32x128xf32>, vector<8x128xf32> -> vector<8x128xf32>
    %cst_30 = arith.constant dense<0.000000e+00> : vector<8x128xf32>
    %43 = tpu.matmul %13, %16, %cst_30 {dimension_numbers = #tpu.dot_dimension_numbers<[1], [0], [0], [1], [0, 0, 1, 1], [], []>} : vector<8x32xf32>, vector<32x128xf32>, vector<8x128xf32> -> vector<8x128xf32>
    %44 = arith.addf %42, %43 : vector<8x128xf32>
    %45 = vector.broadcast %17 : vector<1x128xf32> to vector<8x128xf32>
    %46 = arith.addf %44, %45 : vector<8x128xf32>
    %47 = math.tanh %46 : vector<8x128xf32>
    %cst_31 = arith.constant 5.000000e-01 : f32
    %48 = vector.broadcast %cst_31 : f32 to vector<8x128xf32>
    %49 = arith.mulf %48, %47 : vector<8x128xf32>
    %cst_32 = arith.constant 5.000000e-01 : f32
    %50 = vector.broadcast %cst_32 : f32 to vector<8x128xf32>
    %51 = arith.addf %49, %50 : vector<8x128xf32>
    %52 = arith.select %12, %47, %51 : vector<8x128xi1>, vector<8x128xf32>
    %53 = vector.extract_strided_slice %52 {offsets = [0, 0], sizes = [8, 32], strides = [1, 1]} : vector<8x128xf32> to vector<8x32xf32>
    %54 = vector.extract_strided_slice %52 {offsets = [0, 32], sizes = [8, 32], strides = [1, 1]} : vector<8x128xf32> to vector<8x32xf32>
    %55 = vector.extract_strided_slice %52 {offsets = [0, 64], sizes = [8, 32], strides = [1, 1]} : vector<8x128xf32> to vector<8x32xf32>
    %56 = vector.extract_strided_slice %52 {offsets = [0, 96], sizes = [8, 32], strides = [1, 1]} : vector<8x128xf32> to vector<8x32xf32>
    %57 = arith.mulf %54, %13 : vector<8x32xf32>
    %58 = arith.mulf %53, %55 : vector<8x32xf32>
    %59 = arith.addf %57, %58 : vector<8x32xf32>
    %60 = math.tanh %59 : vector<8x32xf32>
    %61 = arith.mulf %56, %60 : vector<8x32xf32>
    %62 = math.tanh %41 : vector<8x128xf32>
    %cst_33 = arith.constant 5.000000e-01 : f32
    %63 = vector.broadcast %cst_33 : f32 to vector<8x128xf32>
    %64 = arith.mulf %63, %62 : vector<8x128xf32>
    %cst_34 = arith.constant 5.000000e-01 : f32
    %65 = vector.broadcast %cst_34 : f32 to vector<8x128xf32>
    %66 = arith.addf %64, %65 : vector<8x128xf32>
    %67 = arith.select %12, %62, %66 : vector<8x128xi1>, vector<8x128xf32>
    %68 = vector.extract_strided_slice %67 {offsets = [0, 0], sizes = [8, 32], strides = [1, 1]} : vector<8x128xf32> to vector<8x32xf32>
    %69 = vector.extract_strided_slice %67 {offsets = [0, 32], sizes = [8, 32], strides = [1, 1]} : vector<8x128xf32> to vector<8x32xf32>
    %70 = vector.extract_strided_slice %67 {offsets = [0, 64], sizes = [8, 32], strides = [1, 1]} : vector<8x128xf32> to vector<8x32xf32>
    %71 = vector.extract_strided_slice %67 {offsets = [0, 96], sizes = [8, 32], strides = [1, 1]} : vector<8x128xf32> to vector<8x32xf32>
    %72 = arith.mulf %69, %36 : vector<8x32xf32>
    %73 = arith.mulf %68, %70 : vector<8x32xf32>
    %74 = arith.addf %72, %73 : vector<8x32xf32>
    %75 = math.tanh %74 : vector<8x32xf32>
    %76 = arith.mulf %71, %75 : vector<8x32xf32>
    %c16 = arith.constant 16 : index
    %c0_35 = arith.constant 0 : index
    %77 = vector.load %arg13[%c16, %c0_35] : memref<64x128xf32, #tpu.memory_space<vmem>>, vector<8x128xf32>
    %cst_36 = arith.constant dense<0.000000e+00> : vector<8x128xf32>
    %78 = tpu.matmul %76, %14, %cst_36 {dimension_numbers = #tpu.dot_dimension_numbers<[1], [0], [0], [1], [0, 0, 1, 1], [], []>} : vector<8x32xf32>, vector<32x128xf32>, vector<8x128xf32> -> vector<8x128xf32>
    %79 = arith.addf %77, %78 : vector<8x128xf32>
    %cst_37 = arith.constant dense<0.000000e+00> : vector<8x128xf32>
    %80 = tpu.matmul %76, %15, %cst_37 {dimension_numbers = #tpu.dot_dimension_numbers<[1], [0], [0], [1], [0, 0, 1, 1], [], []>} : vector<8x32xf32>, vector<32x128xf32>, vector<8x128xf32> -> vector<8x128xf32>
    %cst_38 = arith.constant dense<0.000000e+00> : vector<8x128xf32>
    %81 = tpu.matmul %61, %16, %cst_38 {dimension_numbers = #tpu.dot_dimension_numbers<[1], [0], [0], [1], [0, 0, 1, 1], [], []>} : vector<8x32xf32>, vector<32x128xf32>, vector<8x128xf32> -> vector<8x128xf32>
    %82 = arith.addf %80, %81 : vector<8x128xf32>
    %83 = vector.broadcast %17 : vector<1x128xf32> to vector<8x128xf32>
    %84 = arith.addf %82, %83 : vector<8x128xf32>
    %cst_39 = arith.constant dense<0.000000e+00> : vector<8x128xf32>
    %85 = tpu.matmul %61, %18, %cst_39 {dimension_numbers = #tpu.dot_dimension_numbers<[1], [0], [0], [1], [0, 0, 1, 1], [], []>} : vector<8x32xf32>, vector<32x128xf32>, vector<8x128xf32> -> vector<8x128xf32>
    %cst_40 = arith.constant dense<0.000000e+00> : vector<8x128xf32>
    %86 = tpu.matmul %13, %19, %cst_40 {dimension_numbers = #tpu.dot_dimension_numbers<[1], [0], [0], [1], [0, 0, 1, 1], [], []>} : vector<8x32xf32>, vector<32x128xf32>, vector<8x128xf32> -> vector<8x128xf32>
    %87 = arith.addf %85, %86 : vector<8x128xf32>
    %88 = vector.broadcast %20 : vector<1x128xf32> to vector<8x128xf32>
    %89 = arith.addf %87, %88 : vector<8x128xf32>
    %90 = math.tanh %89 : vector<8x128xf32>
    %cst_41 = arith.constant 5.000000e-01 : f32
    %91 = vector.broadcast %cst_41 : f32 to vector<8x128xf32>
    %92 = arith.mulf %91, %90 : vector<8x128xf32>
    %cst_42 = arith.constant 5.000000e-01 : f32
    %93 = vector.broadcast %cst_42 : f32 to vector<8x128xf32>
    %94 = arith.addf %92, %93 : vector<8x128xf32>
    %95 = arith.select %12, %90, %94 : vector<8x128xi1>, vector<8x128xf32>
    %96 = vector.extract_strided_slice %95 {offsets = [0, 0], sizes = [8, 32], strides = [1, 1]} : vector<8x128xf32> to vector<8x32xf32>
    %97 = vector.extract_strided_slice %95 {offsets = [0, 32], sizes = [8, 32], strides = [1, 1]} : vector<8x128xf32> to vector<8x32xf32>
    %98 = vector.extract_strided_slice %95 {offsets = [0, 64], sizes = [8, 32], strides = [1, 1]} : vector<8x128xf32> to vector<8x32xf32>
    %99 = vector.extract_strided_slice %95 {offsets = [0, 96], sizes = [8, 32], strides = [1, 1]} : vector<8x128xf32> to vector<8x32xf32>
    %100 = arith.mulf %97, %13 : vector<8x32xf32>
    %101 = arith.mulf %96, %98 : vector<8x32xf32>
    %102 = arith.addf %100, %101 : vector<8x32xf32>
    %103 = math.tanh %102 : vector<8x32xf32>
    %104 = arith.mulf %99, %103 : vector<8x32xf32>
    %105 = math.tanh %84 : vector<8x128xf32>
    %cst_43 = arith.constant 5.000000e-01 : f32
    %106 = vector.broadcast %cst_43 : f32 to vector<8x128xf32>
    %107 = arith.mulf %106, %105 : vector<8x128xf32>
    %cst_44 = arith.constant 5.000000e-01 : f32
    %108 = vector.broadcast %cst_44 : f32 to vector<8x128xf32>
    %109 = arith.addf %107, %108 : vector<8x128xf32>
    %110 = arith.select %12, %105, %109 : vector<8x128xi1>, vector<8x128xf32>
    %111 = vector.extract_strided_slice %110 {offsets = [0, 0], sizes = [8, 32], strides = [1, 1]} : vector<8x128xf32> to vector<8x32xf32>
    %112 = vector.extract_strided_slice %110 {offsets = [0, 32], sizes = [8, 32], strides = [1, 1]} : vector<8x128xf32> to vector<8x32xf32>
    %113 = vector.extract_strided_slice %110 {offsets = [0, 64], sizes = [8, 32], strides = [1, 1]} : vector<8x128xf32> to vector<8x32xf32>
    %114 = vector.extract_strided_slice %110 {offsets = [0, 96], sizes = [8, 32], strides = [1, 1]} : vector<8x128xf32> to vector<8x32xf32>
    %115 = arith.mulf %112, %59 : vector<8x32xf32>
    %116 = arith.mulf %111, %113 : vector<8x32xf32>
    %117 = arith.addf %115, %116 : vector<8x32xf32>
    %118 = math.tanh %117 : vector<8x32xf32>
    %119 = arith.mulf %114, %118 : vector<8x32xf32>
    %120 = math.tanh %79 : vector<8x128xf32>
    %cst_45 = arith.constant 5.000000e-01 : f32
    %121 = vector.broadcast %cst_45 : f32 to vector<8x128xf32>
    %122 = arith.mulf %121, %120 : vector<8x128xf32>
    %cst_46 = arith.constant 5.000000e-01 : f32
    %123 = vector.broadcast %cst_46 : f32 to vector<8x128xf32>
    %124 = arith.addf %122, %123 : vector<8x128xf32>
    %125 = arith.select %12, %120, %124 : vector<8x128xi1>, vector<8x128xf32>
    %126 = vector.extract_strided_slice %125 {offsets = [0, 0], sizes = [8, 32], strides = [1, 1]} : vector<8x128xf32> to vector<8x32xf32>
    %127 = vector.extract_strided_slice %125 {offsets = [0, 32], sizes = [8, 32], strides = [1, 1]} : vector<8x128xf32> to vector<8x32xf32>
    %128 = vector.extract_strided_slice %125 {offsets = [0, 64], sizes = [8, 32], strides = [1, 1]} : vector<8x128xf32> to vector<8x32xf32>
    %129 = vector.extract_strided_slice %125 {offsets = [0, 96], sizes = [8, 32], strides = [1, 1]} : vector<8x128xf32> to vector<8x32xf32>
    %130 = arith.mulf %127, %74 : vector<8x32xf32>
    %131 = arith.mulf %126, %128 : vector<8x32xf32>
    %132 = arith.addf %130, %131 : vector<8x32xf32>
    %133 = math.tanh %132 : vector<8x32xf32>
    %134 = arith.mulf %129, %133 : vector<8x32xf32>
    %c24 = arith.constant 24 : index
    %c0_47 = arith.constant 0 : index
    %135 = vector.load %arg13[%c24, %c0_47] : memref<64x128xf32, #tpu.memory_space<vmem>>, vector<8x128xf32>
    %cst_48 = arith.constant dense<0.000000e+00> : vector<8x128xf32>
    %136 = tpu.matmul %134, %14, %cst_48 {dimension_numbers = #tpu.dot_dimension_numbers<[1], [0], [0], [1], [0, 0, 1, 1], [], []>} : vector<8x32xf32>, vector<32x128xf32>, vector<8x128xf32> -> vector<8x128xf32>
    %137 = arith.addf %135, %136 : vector<8x128xf32>
    %cst_49 = arith.constant dense<0.000000e+00> : vector<8x128xf32>
    %138 = tpu.matmul %134, %15, %cst_49 {dimension_numbers = #tpu.dot_dimension_numbers<[1], [0], [0], [1], [0, 0, 1, 1], [], []>} : vector<8x32xf32>, vector<32x128xf32>, vector<8x128xf32> -> vector<8x128xf32>
    %cst_50 = arith.constant dense<0.000000e+00> : vector<8x128xf32>
    %139 = tpu.matmul %119, %16, %cst_50 {dimension_numbers = #tpu.dot_dimension_numbers<[1], [0], [0], [1], [0, 0, 1, 1], [], []>} : vector<8x32xf32>, vector<32x128xf32>, vector<8x128xf32> -> vector<8x128xf32>
    %140 = arith.addf %138, %139 : vector<8x128xf32>
    %141 = vector.broadcast %17 : vector<1x128xf32> to vector<8x128xf32>
    %142 = arith.addf %140, %141 : vector<8x128xf32>
    %cst_51 = arith.constant dense<0.000000e+00> : vector<8x128xf32>
    %143 = tpu.matmul %119, %18, %cst_51 {dimension_numbers = #tpu.dot_dimension_numbers<[1], [0], [0], [1], [0, 0, 1, 1], [], []>} : vector<8x32xf32>, vector<32x128xf32>, vector<8x128xf32> -> vector<8x128xf32>
    %cst_52 = arith.constant dense<0.000000e+00> : vector<8x128xf32>
    %144 = tpu.matmul %104, %19, %cst_52 {dimension_numbers = #tpu.dot_dimension_numbers<[1], [0], [0], [1], [0, 0, 1, 1], [], []>} : vector<8x32xf32>, vector<32x128xf32>, vector<8x128xf32> -> vector<8x128xf32>
    %145 = arith.addf %143, %144 : vector<8x128xf32>
    %146 = vector.broadcast %20 : vector<1x128xf32> to vector<8x128xf32>
    %147 = arith.addf %145, %146 : vector<8x128xf32>
    %148 = math.tanh %147 : vector<8x128xf32>
    %cst_53 = arith.constant 5.000000e-01 : f32
    %149 = vector.broadcast %cst_53 : f32 to vector<8x128xf32>
    %150 = arith.mulf %149, %148 : vector<8x128xf32>
    %cst_54 = arith.constant 5.000000e-01 : f32
    %151 = vector.broadcast %cst_54 : f32 to vector<8x128xf32>
    %152 = arith.addf %150, %151 : vector<8x128xf32>
    %153 = arith.select %12, %148, %152 : vector<8x128xi1>, vector<8x128xf32>
    %154 = vector.extract_strided_slice %153 {offsets = [0, 0], sizes = [8, 32], strides = [1, 1]} : vector<8x128xf32> to vector<8x32xf32>
    %155 = vector.extract_strided_slice %153 {offsets = [0, 32], sizes = [8, 32], strides = [1, 1]} : vector<8x128xf32> to vector<8x32xf32>
    %156 = vector.extract_strided_slice %153 {offsets = [0, 64], sizes = [8, 32], strides = [1, 1]} : vector<8x128xf32> to vector<8x32xf32>
    %157 = vector.extract_strided_slice %153 {offsets = [0, 96], sizes = [8, 32], strides = [1, 1]} : vector<8x128xf32> to vector<8x32xf32>
    %158 = arith.mulf %155, %102 : vector<8x32xf32>
    %159 = arith.mulf %154, %156 : vector<8x32xf32>
    %160 = arith.addf %158, %159 : vector<8x32xf32>
    %161 = math.tanh %160 : vector<8x32xf32>
    %162 = arith.mulf %157, %161 : vector<8x32xf32>
    %163 = math.tanh %142 : vector<8x128xf32>
    %cst_55 = arith.constant 5.000000e-01 : f32
    %164 = vector.broadcast %cst_55 : f32 to vector<8x128xf32>
    %165 = arith.mulf %164, %163 : vector<8x128xf32>
    %cst_56 = arith.constant 5.000000e-01 : f32
    %166 = vector.broadcast %cst_56 : f32 to vector<8x128xf32>
    %167 = arith.addf %165, %166 : vector<8x128xf32>
    %168 = arith.select %12, %163, %167 : vector<8x128xi1>, vector<8x128xf32>
    %169 = vector.extract_strided_slice %168 {offsets = [0, 0], sizes = [8, 32], strides = [1, 1]} : vector<8x128xf32> to vector<8x32xf32>
    %170 = vector.extract_strided_slice %168 {offsets = [0, 32], sizes = [8, 32], strides = [1, 1]} : vector<8x128xf32> to vector<8x32xf32>
    %171 = vector.extract_strided_slice %168 {offsets = [0, 64], sizes = [8, 32], strides = [1, 1]} : vector<8x128xf32> to vector<8x32xf32>
    %172 = vector.extract_strided_slice %168 {offsets = [0, 96], sizes = [8, 32], strides = [1, 1]} : vector<8x128xf32> to vector<8x32xf32>
    %173 = arith.mulf %170, %117 : vector<8x32xf32>
    %174 = arith.mulf %169, %171 : vector<8x32xf32>
    %175 = arith.addf %173, %174 : vector<8x32xf32>
    %176 = math.tanh %175 : vector<8x32xf32>
    %177 = arith.mulf %172, %176 : vector<8x32xf32>
    %178 = math.tanh %137 : vector<8x128xf32>
    %cst_57 = arith.constant 5.000000e-01 : f32
    %179 = vector.broadcast %cst_57 : f32 to vector<8x128xf32>
    %180 = arith.mulf %179, %178 : vector<8x128xf32>
    %cst_58 = arith.constant 5.000000e-01 : f32
    %181 = vector.broadcast %cst_58 : f32 to vector<8x128xf32>
    %182 = arith.addf %180, %181 : vector<8x128xf32>
    %183 = arith.select %12, %178, %182 : vector<8x128xi1>, vector<8x128xf32>
    %184 = vector.extract_strided_slice %183 {offsets = [0, 0], sizes = [8, 32], strides = [1, 1]} : vector<8x128xf32> to vector<8x32xf32>
    %185 = vector.extract_strided_slice %183 {offsets = [0, 32], sizes = [8, 32], strides = [1, 1]} : vector<8x128xf32> to vector<8x32xf32>
    %186 = vector.extract_strided_slice %183 {offsets = [0, 64], sizes = [8, 32], strides = [1, 1]} : vector<8x128xf32> to vector<8x32xf32>
    %187 = vector.extract_strided_slice %183 {offsets = [0, 96], sizes = [8, 32], strides = [1, 1]} : vector<8x128xf32> to vector<8x32xf32>
    %188 = arith.mulf %185, %132 : vector<8x32xf32>
    %189 = arith.mulf %184, %186 : vector<8x32xf32>
    %190 = arith.addf %188, %189 : vector<8x32xf32>
    %191 = math.tanh %190 : vector<8x32xf32>
    %192 = arith.mulf %187, %191 : vector<8x32xf32>
    %c32 = arith.constant 32 : index
    %c0_59 = arith.constant 0 : index
    %193 = vector.load %arg13[%c32, %c0_59] : memref<64x128xf32, #tpu.memory_space<vmem>>, vector<8x128xf32>
    %cst_60 = arith.constant dense<0.000000e+00> : vector<8x128xf32>
    %194 = tpu.matmul %192, %14, %cst_60 {dimension_numbers = #tpu.dot_dimension_numbers<[1], [0], [0], [1], [0, 0, 1, 1], [], []>} : vector<8x32xf32>, vector<32x128xf32>, vector<8x128xf32> -> vector<8x128xf32>
    %195 = arith.addf %193, %194 : vector<8x128xf32>
    %cst_61 = arith.constant dense<0.000000e+00> : vector<8x128xf32>
    %196 = tpu.matmul %192, %15, %cst_61 {dimension_numbers = #tpu.dot_dimension_numbers<[1], [0], [0], [1], [0, 0, 1, 1], [], []>} : vector<8x32xf32>, vector<32x128xf32>, vector<8x128xf32> -> vector<8x128xf32>
    %cst_62 = arith.constant dense<0.000000e+00> : vector<8x128xf32>
    %197 = tpu.matmul %177, %16, %cst_62 {dimension_numbers = #tpu.dot_dimension_numbers<[1], [0], [0], [1], [0, 0, 1, 1], [], []>} : vector<8x32xf32>, vector<32x128xf32>, vector<8x128xf32> -> vector<8x128xf32>
    %198 = arith.addf %196, %197 : vector<8x128xf32>
    %199 = vector.broadcast %17 : vector<1x128xf32> to vector<8x128xf32>
    %200 = arith.addf %198, %199 : vector<8x128xf32>
    %cst_63 = arith.constant dense<0.000000e+00> : vector<8x128xf32>
    %201 = tpu.matmul %177, %18, %cst_63 {dimension_numbers = #tpu.dot_dimension_numbers<[1], [0], [0], [1], [0, 0, 1, 1], [], []>} : vector<8x32xf32>, vector<32x128xf32>, vector<8x128xf32> -> vector<8x128xf32>
    %cst_64 = arith.constant dense<0.000000e+00> : vector<8x128xf32>
    %202 = tpu.matmul %162, %19, %cst_64 {dimension_numbers = #tpu.dot_dimension_numbers<[1], [0], [0], [1], [0, 0, 1, 1], [], []>} : vector<8x32xf32>, vector<32x128xf32>, vector<8x128xf32> -> vector<8x128xf32>
    %203 = arith.addf %201, %202 : vector<8x128xf32>
    %204 = vector.broadcast %20 : vector<1x128xf32> to vector<8x128xf32>
    %205 = arith.addf %203, %204 : vector<8x128xf32>
    %206 = math.tanh %205 : vector<8x128xf32>
    %cst_65 = arith.constant 5.000000e-01 : f32
    %207 = vector.broadcast %cst_65 : f32 to vector<8x128xf32>
    %208 = arith.mulf %207, %206 : vector<8x128xf32>
    %cst_66 = arith.constant 5.000000e-01 : f32
    %209 = vector.broadcast %cst_66 : f32 to vector<8x128xf32>
    %210 = arith.addf %208, %209 : vector<8x128xf32>
    %211 = arith.select %12, %206, %210 : vector<8x128xi1>, vector<8x128xf32>
    %212 = vector.extract_strided_slice %211 {offsets = [0, 0], sizes = [8, 32], strides = [1, 1]} : vector<8x128xf32> to vector<8x32xf32>
    %213 = vector.extract_strided_slice %211 {offsets = [0, 32], sizes = [8, 32], strides = [1, 1]} : vector<8x128xf32> to vector<8x32xf32>
    %214 = vector.extract_strided_slice %211 {offsets = [0, 64], sizes = [8, 32], strides = [1, 1]} : vector<8x128xf32> to vector<8x32xf32>
    %215 = vector.extract_strided_slice %211 {offsets = [0, 96], sizes = [8, 32], strides = [1, 1]} : vector<8x128xf32> to vector<8x32xf32>
    %216 = arith.mulf %213, %160 : vector<8x32xf32>
    %217 = arith.mulf %212, %214 : vector<8x32xf32>
    %218 = arith.addf %216, %217 : vector<8x32xf32>
    %219 = math.tanh %218 : vector<8x32xf32>
    %220 = arith.mulf %215, %219 : vector<8x32xf32>
    %221 = math.tanh %200 : vector<8x128xf32>
    %cst_67 = arith.constant 5.000000e-01 : f32
    %222 = vector.broadcast %cst_67 : f32 to vector<8x128xf32>
    %223 = arith.mulf %222, %221 : vector<8x128xf32>
    %cst_68 = arith.constant 5.000000e-01 : f32
    %224 = vector.broadcast %cst_68 : f32 to vector<8x128xf32>
    %225 = arith.addf %223, %224 : vector<8x128xf32>
    %226 = arith.select %12, %221, %225 : vector<8x128xi1>, vector<8x128xf32>
    %227 = vector.extract_strided_slice %226 {offsets = [0, 0], sizes = [8, 32], strides = [1, 1]} : vector<8x128xf32> to vector<8x32xf32>
    %228 = vector.extract_strided_slice %226 {offsets = [0, 32], sizes = [8, 32], strides = [1, 1]} : vector<8x128xf32> to vector<8x32xf32>
    %229 = vector.extract_strided_slice %226 {offsets = [0, 64], sizes = [8, 32], strides = [1, 1]} : vector<8x128xf32> to vector<8x32xf32>
    %230 = vector.extract_strided_slice %226 {offsets = [0, 96], sizes = [8, 32], strides = [1, 1]} : vector<8x128xf32> to vector<8x32xf32>
    %231 = arith.mulf %228, %175 : vector<8x32xf32>
    %232 = arith.mulf %227, %229 : vector<8x32xf32>
    %233 = arith.addf %231, %232 : vector<8x32xf32>
    %234 = math.tanh %233 : vector<8x32xf32>
    %235 = arith.mulf %230, %234 : vector<8x32xf32>
    %236 = math.tanh %195 : vector<8x128xf32>
    %cst_69 = arith.constant 5.000000e-01 : f32
    %237 = vector.broadcast %cst_69 : f32 to vector<8x128xf32>
    %238 = arith.mulf %237, %236 : vector<8x128xf32>
    %cst_70 = arith.constant 5.000000e-01 : f32
    %239 = vector.broadcast %cst_70 : f32 to vector<8x128xf32>
    %240 = arith.addf %238, %239 : vector<8x128xf32>
    %241 = arith.select %12, %236, %240 : vector<8x128xi1>, vector<8x128xf32>
    %242 = vector.extract_strided_slice %241 {offsets = [0, 0], sizes = [8, 32], strides = [1, 1]} : vector<8x128xf32> to vector<8x32xf32>
    %243 = vector.extract_strided_slice %241 {offsets = [0, 32], sizes = [8, 32], strides = [1, 1]} : vector<8x128xf32> to vector<8x32xf32>
    %244 = vector.extract_strided_slice %241 {offsets = [0, 64], sizes = [8, 32], strides = [1, 1]} : vector<8x128xf32> to vector<8x32xf32>
    %245 = vector.extract_strided_slice %241 {offsets = [0, 96], sizes = [8, 32], strides = [1, 1]} : vector<8x128xf32> to vector<8x32xf32>
    %246 = arith.mulf %243, %190 : vector<8x32xf32>
    %247 = arith.mulf %242, %244 : vector<8x32xf32>
    %248 = arith.addf %246, %247 : vector<8x32xf32>
    %249 = math.tanh %248 : vector<8x32xf32>
    %250 = arith.mulf %245, %249 : vector<8x32xf32>
    %c40 = arith.constant 40 : index
    %c0_71 = arith.constant 0 : index
    %251 = vector.load %arg13[%c40, %c0_71] : memref<64x128xf32, #tpu.memory_space<vmem>>, vector<8x128xf32>
    %cst_72 = arith.constant dense<0.000000e+00> : vector<8x128xf32>
    %252 = tpu.matmul %250, %14, %cst_72 {dimension_numbers = #tpu.dot_dimension_numbers<[1], [0], [0], [1], [0, 0, 1, 1], [], []>} : vector<8x32xf32>, vector<32x128xf32>, vector<8x128xf32> -> vector<8x128xf32>
    %253 = arith.addf %251, %252 : vector<8x128xf32>
    %cst_73 = arith.constant dense<0.000000e+00> : vector<8x128xf32>
    %254 = tpu.matmul %250, %15, %cst_73 {dimension_numbers = #tpu.dot_dimension_numbers<[1], [0], [0], [1], [0, 0, 1, 1], [], []>} : vector<8x32xf32>, vector<32x128xf32>, vector<8x128xf32> -> vector<8x128xf32>
    %cst_74 = arith.constant dense<0.000000e+00> : vector<8x128xf32>
    %255 = tpu.matmul %235, %16, %cst_74 {dimension_numbers = #tpu.dot_dimension_numbers<[1], [0], [0], [1], [0, 0, 1, 1], [], []>} : vector<8x32xf32>, vector<32x128xf32>, vector<8x128xf32> -> vector<8x128xf32>
    %256 = arith.addf %254, %255 : vector<8x128xf32>
    %257 = vector.broadcast %17 : vector<1x128xf32> to vector<8x128xf32>
    %258 = arith.addf %256, %257 : vector<8x128xf32>
    %cst_75 = arith.constant dense<0.000000e+00> : vector<8x128xf32>
    %259 = tpu.matmul %235, %18, %cst_75 {dimension_numbers = #tpu.dot_dimension_numbers<[1], [0], [0], [1], [0, 0, 1, 1], [], []>} : vector<8x32xf32>, vector<32x128xf32>, vector<8x128xf32> -> vector<8x128xf32>
    %cst_76 = arith.constant dense<0.000000e+00> : vector<8x128xf32>
    %260 = tpu.matmul %220, %19, %cst_76 {dimension_numbers = #tpu.dot_dimension_numbers<[1], [0], [0], [1], [0, 0, 1, 1], [], []>} : vector<8x32xf32>, vector<32x128xf32>, vector<8x128xf32> -> vector<8x128xf32>
    %261 = arith.addf %259, %260 : vector<8x128xf32>
    %262 = vector.broadcast %20 : vector<1x128xf32> to vector<8x128xf32>
    %263 = arith.addf %261, %262 : vector<8x128xf32>
    %264 = math.tanh %263 : vector<8x128xf32>
    %cst_77 = arith.constant 5.000000e-01 : f32
    %265 = vector.broadcast %cst_77 : f32 to vector<8x128xf32>
    %266 = arith.mulf %265, %264 : vector<8x128xf32>
    %cst_78 = arith.constant 5.000000e-01 : f32
    %267 = vector.broadcast %cst_78 : f32 to vector<8x128xf32>
    %268 = arith.addf %266, %267 : vector<8x128xf32>
    %269 = arith.select %12, %264, %268 : vector<8x128xi1>, vector<8x128xf32>
    %270 = vector.extract_strided_slice %269 {offsets = [0, 0], sizes = [8, 32], strides = [1, 1]} : vector<8x128xf32> to vector<8x32xf32>
    %271 = vector.extract_strided_slice %269 {offsets = [0, 32], sizes = [8, 32], strides = [1, 1]} : vector<8x128xf32> to vector<8x32xf32>
    %272 = vector.extract_strided_slice %269 {offsets = [0, 64], sizes = [8, 32], strides = [1, 1]} : vector<8x128xf32> to vector<8x32xf32>
    %273 = vector.extract_strided_slice %269 {offsets = [0, 96], sizes = [8, 32], strides = [1, 1]} : vector<8x128xf32> to vector<8x32xf32>
    %274 = arith.mulf %271, %218 : vector<8x32xf32>
    %275 = arith.mulf %270, %272 : vector<8x32xf32>
    %276 = arith.addf %274, %275 : vector<8x32xf32>
    %277 = math.tanh %276 : vector<8x32xf32>
    %278 = arith.mulf %273, %277 : vector<8x32xf32>
    %279 = math.tanh %258 : vector<8x128xf32>
    %cst_79 = arith.constant 5.000000e-01 : f32
    %280 = vector.broadcast %cst_79 : f32 to vector<8x128xf32>
    %281 = arith.mulf %280, %279 : vector<8x128xf32>
    %cst_80 = arith.constant 5.000000e-01 : f32
    %282 = vector.broadcast %cst_80 : f32 to vector<8x128xf32>
    %283 = arith.addf %281, %282 : vector<8x128xf32>
    %284 = arith.select %12, %279, %283 : vector<8x128xi1>, vector<8x128xf32>
    %285 = vector.extract_strided_slice %284 {offsets = [0, 0], sizes = [8, 32], strides = [1, 1]} : vector<8x128xf32> to vector<8x32xf32>
    %286 = vector.extract_strided_slice %284 {offsets = [0, 32], sizes = [8, 32], strides = [1, 1]} : vector<8x128xf32> to vector<8x32xf32>
    %287 = vector.extract_strided_slice %284 {offsets = [0, 64], sizes = [8, 32], strides = [1, 1]} : vector<8x128xf32> to vector<8x32xf32>
    %288 = vector.extract_strided_slice %284 {offsets = [0, 96], sizes = [8, 32], strides = [1, 1]} : vector<8x128xf32> to vector<8x32xf32>
    %289 = arith.mulf %286, %233 : vector<8x32xf32>
    %290 = arith.mulf %285, %287 : vector<8x32xf32>
    %291 = arith.addf %289, %290 : vector<8x32xf32>
    %292 = math.tanh %291 : vector<8x32xf32>
    %293 = arith.mulf %288, %292 : vector<8x32xf32>
    %294 = math.tanh %253 : vector<8x128xf32>
    %cst_81 = arith.constant 5.000000e-01 : f32
    %295 = vector.broadcast %cst_81 : f32 to vector<8x128xf32>
    %296 = arith.mulf %295, %294 : vector<8x128xf32>
    %cst_82 = arith.constant 5.000000e-01 : f32
    %297 = vector.broadcast %cst_82 : f32 to vector<8x128xf32>
    %298 = arith.addf %296, %297 : vector<8x128xf32>
    %299 = arith.select %12, %294, %298 : vector<8x128xi1>, vector<8x128xf32>
    %300 = vector.extract_strided_slice %299 {offsets = [0, 0], sizes = [8, 32], strides = [1, 1]} : vector<8x128xf32> to vector<8x32xf32>
    %301 = vector.extract_strided_slice %299 {offsets = [0, 32], sizes = [8, 32], strides = [1, 1]} : vector<8x128xf32> to vector<8x32xf32>
    %302 = vector.extract_strided_slice %299 {offsets = [0, 64], sizes = [8, 32], strides = [1, 1]} : vector<8x128xf32> to vector<8x32xf32>
    %303 = vector.extract_strided_slice %299 {offsets = [0, 96], sizes = [8, 32], strides = [1, 1]} : vector<8x128xf32> to vector<8x32xf32>
    %304 = arith.mulf %301, %248 : vector<8x32xf32>
    %305 = arith.mulf %300, %302 : vector<8x32xf32>
    %306 = arith.addf %304, %305 : vector<8x32xf32>
    %307 = math.tanh %306 : vector<8x32xf32>
    %308 = arith.mulf %303, %307 : vector<8x32xf32>
    %c48 = arith.constant 48 : index
    %c0_83 = arith.constant 0 : index
    %309 = vector.load %arg13[%c48, %c0_83] : memref<64x128xf32, #tpu.memory_space<vmem>>, vector<8x128xf32>
    %cst_84 = arith.constant dense<0.000000e+00> : vector<8x128xf32>
    %310 = tpu.matmul %308, %14, %cst_84 {dimension_numbers = #tpu.dot_dimension_numbers<[1], [0], [0], [1], [0, 0, 1, 1], [], []>} : vector<8x32xf32>, vector<32x128xf32>, vector<8x128xf32> -> vector<8x128xf32>
    %311 = arith.addf %309, %310 : vector<8x128xf32>
    %cst_85 = arith.constant dense<0.000000e+00> : vector<8x128xf32>
    %312 = tpu.matmul %308, %15, %cst_85 {dimension_numbers = #tpu.dot_dimension_numbers<[1], [0], [0], [1], [0, 0, 1, 1], [], []>} : vector<8x32xf32>, vector<32x128xf32>, vector<8x128xf32> -> vector<8x128xf32>
    %cst_86 = arith.constant dense<0.000000e+00> : vector<8x128xf32>
    %313 = tpu.matmul %293, %16, %cst_86 {dimension_numbers = #tpu.dot_dimension_numbers<[1], [0], [0], [1], [0, 0, 1, 1], [], []>} : vector<8x32xf32>, vector<32x128xf32>, vector<8x128xf32> -> vector<8x128xf32>
    %314 = arith.addf %312, %313 : vector<8x128xf32>
    %315 = vector.broadcast %17 : vector<1x128xf32> to vector<8x128xf32>
    %316 = arith.addf %314, %315 : vector<8x128xf32>
    %cst_87 = arith.constant dense<0.000000e+00> : vector<8x128xf32>
    %317 = tpu.matmul %293, %18, %cst_87 {dimension_numbers = #tpu.dot_dimension_numbers<[1], [0], [0], [1], [0, 0, 1, 1], [], []>} : vector<8x32xf32>, vector<32x128xf32>, vector<8x128xf32> -> vector<8x128xf32>
    %cst_88 = arith.constant dense<0.000000e+00> : vector<8x128xf32>
    %318 = tpu.matmul %278, %19, %cst_88 {dimension_numbers = #tpu.dot_dimension_numbers<[1], [0], [0], [1], [0, 0, 1, 1], [], []>} : vector<8x32xf32>, vector<32x128xf32>, vector<8x128xf32> -> vector<8x128xf32>
    %319 = arith.addf %317, %318 : vector<8x128xf32>
    %320 = vector.broadcast %20 : vector<1x128xf32> to vector<8x128xf32>
    %321 = arith.addf %319, %320 : vector<8x128xf32>
    %322 = math.tanh %321 : vector<8x128xf32>
    %cst_89 = arith.constant 5.000000e-01 : f32
    %323 = vector.broadcast %cst_89 : f32 to vector<8x128xf32>
    %324 = arith.mulf %323, %322 : vector<8x128xf32>
    %cst_90 = arith.constant 5.000000e-01 : f32
    %325 = vector.broadcast %cst_90 : f32 to vector<8x128xf32>
    %326 = arith.addf %324, %325 : vector<8x128xf32>
    %327 = arith.select %12, %322, %326 : vector<8x128xi1>, vector<8x128xf32>
    %328 = vector.extract_strided_slice %327 {offsets = [0, 0], sizes = [8, 32], strides = [1, 1]} : vector<8x128xf32> to vector<8x32xf32>
    %329 = vector.extract_strided_slice %327 {offsets = [0, 32], sizes = [8, 32], strides = [1, 1]} : vector<8x128xf32> to vector<8x32xf32>
    %330 = vector.extract_strided_slice %327 {offsets = [0, 64], sizes = [8, 32], strides = [1, 1]} : vector<8x128xf32> to vector<8x32xf32>
    %331 = vector.extract_strided_slice %327 {offsets = [0, 96], sizes = [8, 32], strides = [1, 1]} : vector<8x128xf32> to vector<8x32xf32>
    %332 = arith.mulf %329, %276 : vector<8x32xf32>
    %333 = arith.mulf %328, %330 : vector<8x32xf32>
    %334 = arith.addf %332, %333 : vector<8x32xf32>
    %335 = math.tanh %334 : vector<8x32xf32>
    %336 = arith.mulf %331, %335 : vector<8x32xf32>
    %337 = math.tanh %316 : vector<8x128xf32>
    %cst_91 = arith.constant 5.000000e-01 : f32
    %338 = vector.broadcast %cst_91 : f32 to vector<8x128xf32>
    %339 = arith.mulf %338, %337 : vector<8x128xf32>
    %cst_92 = arith.constant 5.000000e-01 : f32
    %340 = vector.broadcast %cst_92 : f32 to vector<8x128xf32>
    %341 = arith.addf %339, %340 : vector<8x128xf32>
    %342 = arith.select %12, %337, %341 : vector<8x128xi1>, vector<8x128xf32>
    %343 = vector.extract_strided_slice %342 {offsets = [0, 0], sizes = [8, 32], strides = [1, 1]} : vector<8x128xf32> to vector<8x32xf32>
    %344 = vector.extract_strided_slice %342 {offsets = [0, 32], sizes = [8, 32], strides = [1, 1]} : vector<8x128xf32> to vector<8x32xf32>
    %345 = vector.extract_strided_slice %342 {offsets = [0, 64], sizes = [8, 32], strides = [1, 1]} : vector<8x128xf32> to vector<8x32xf32>
    %346 = vector.extract_strided_slice %342 {offsets = [0, 96], sizes = [8, 32], strides = [1, 1]} : vector<8x128xf32> to vector<8x32xf32>
    %347 = arith.mulf %344, %291 : vector<8x32xf32>
    %348 = arith.mulf %343, %345 : vector<8x32xf32>
    %349 = arith.addf %347, %348 : vector<8x32xf32>
    %350 = math.tanh %349 : vector<8x32xf32>
    %351 = arith.mulf %346, %350 : vector<8x32xf32>
    %352 = math.tanh %311 : vector<8x128xf32>
    %cst_93 = arith.constant 5.000000e-01 : f32
    %353 = vector.broadcast %cst_93 : f32 to vector<8x128xf32>
    %354 = arith.mulf %353, %352 : vector<8x128xf32>
    %cst_94 = arith.constant 5.000000e-01 : f32
    %355 = vector.broadcast %cst_94 : f32 to vector<8x128xf32>
    %356 = arith.addf %354, %355 : vector<8x128xf32>
    %357 = arith.select %12, %352, %356 : vector<8x128xi1>, vector<8x128xf32>
    %358 = vector.extract_strided_slice %357 {offsets = [0, 0], sizes = [8, 32], strides = [1, 1]} : vector<8x128xf32> to vector<8x32xf32>
    %359 = vector.extract_strided_slice %357 {offsets = [0, 32], sizes = [8, 32], strides = [1, 1]} : vector<8x128xf32> to vector<8x32xf32>
    %360 = vector.extract_strided_slice %357 {offsets = [0, 64], sizes = [8, 32], strides = [1, 1]} : vector<8x128xf32> to vector<8x32xf32>
    %361 = vector.extract_strided_slice %357 {offsets = [0, 96], sizes = [8, 32], strides = [1, 1]} : vector<8x128xf32> to vector<8x32xf32>
    %362 = arith.mulf %359, %306 : vector<8x32xf32>
    %363 = arith.mulf %358, %360 : vector<8x32xf32>
    %364 = arith.addf %362, %363 : vector<8x32xf32>
    %365 = math.tanh %364 : vector<8x32xf32>
    %366 = arith.mulf %361, %365 : vector<8x32xf32>
    %c56 = arith.constant 56 : index
    %c0_95 = arith.constant 0 : index
    %367 = vector.load %arg13[%c56, %c0_95] : memref<64x128xf32, #tpu.memory_space<vmem>>, vector<8x128xf32>
    %cst_96 = arith.constant dense<0.000000e+00> : vector<8x128xf32>
    %368 = tpu.matmul %366, %14, %cst_96 {dimension_numbers = #tpu.dot_dimension_numbers<[1], [0], [0], [1], [0, 0, 1, 1], [], []>} : vector<8x32xf32>, vector<32x128xf32>, vector<8x128xf32> -> vector<8x128xf32>
    %369 = arith.addf %367, %368 : vector<8x128xf32>
    %cst_97 = arith.constant dense<0.000000e+00> : vector<8x128xf32>
    %370 = tpu.matmul %366, %15, %cst_97 {dimension_numbers = #tpu.dot_dimension_numbers<[1], [0], [0], [1], [0, 0, 1, 1], [], []>} : vector<8x32xf32>, vector<32x128xf32>, vector<8x128xf32> -> vector<8x128xf32>
    %cst_98 = arith.constant dense<0.000000e+00> : vector<8x128xf32>
    %371 = tpu.matmul %351, %16, %cst_98 {dimension_numbers = #tpu.dot_dimension_numbers<[1], [0], [0], [1], [0, 0, 1, 1], [], []>} : vector<8x32xf32>, vector<32x128xf32>, vector<8x128xf32> -> vector<8x128xf32>
    %372 = arith.addf %370, %371 : vector<8x128xf32>
    %373 = vector.broadcast %17 : vector<1x128xf32> to vector<8x128xf32>
    %374 = arith.addf %372, %373 : vector<8x128xf32>
    %cst_99 = arith.constant dense<0.000000e+00> : vector<8x128xf32>
    %375 = tpu.matmul %351, %18, %cst_99 {dimension_numbers = #tpu.dot_dimension_numbers<[1], [0], [0], [1], [0, 0, 1, 1], [], []>} : vector<8x32xf32>, vector<32x128xf32>, vector<8x128xf32> -> vector<8x128xf32>
    %cst_100 = arith.constant dense<0.000000e+00> : vector<8x128xf32>
    %376 = tpu.matmul %336, %19, %cst_100 {dimension_numbers = #tpu.dot_dimension_numbers<[1], [0], [0], [1], [0, 0, 1, 1], [], []>} : vector<8x32xf32>, vector<32x128xf32>, vector<8x128xf32> -> vector<8x128xf32>
    %377 = arith.addf %375, %376 : vector<8x128xf32>
    %378 = vector.broadcast %20 : vector<1x128xf32> to vector<8x128xf32>
    %379 = arith.addf %377, %378 : vector<8x128xf32>
    %380 = math.tanh %379 : vector<8x128xf32>
    %cst_101 = arith.constant 5.000000e-01 : f32
    %381 = vector.broadcast %cst_101 : f32 to vector<8x128xf32>
    %382 = arith.mulf %381, %380 : vector<8x128xf32>
    %cst_102 = arith.constant 5.000000e-01 : f32
    %383 = vector.broadcast %cst_102 : f32 to vector<8x128xf32>
    %384 = arith.addf %382, %383 : vector<8x128xf32>
    %385 = arith.select %12, %380, %384 : vector<8x128xi1>, vector<8x128xf32>
    %386 = vector.extract_strided_slice %385 {offsets = [0, 0], sizes = [8, 32], strides = [1, 1]} : vector<8x128xf32> to vector<8x32xf32>
    %387 = vector.extract_strided_slice %385 {offsets = [0, 32], sizes = [8, 32], strides = [1, 1]} : vector<8x128xf32> to vector<8x32xf32>
    %388 = vector.extract_strided_slice %385 {offsets = [0, 64], sizes = [8, 32], strides = [1, 1]} : vector<8x128xf32> to vector<8x32xf32>
    %389 = vector.extract_strided_slice %385 {offsets = [0, 96], sizes = [8, 32], strides = [1, 1]} : vector<8x128xf32> to vector<8x32xf32>
    %390 = arith.mulf %387, %334 : vector<8x32xf32>
    %391 = arith.mulf %386, %388 : vector<8x32xf32>
    %392 = arith.addf %390, %391 : vector<8x32xf32>
    %393 = math.tanh %392 : vector<8x32xf32>
    %394 = arith.mulf %389, %393 : vector<8x32xf32>
    %395 = math.tanh %374 : vector<8x128xf32>
    %cst_103 = arith.constant 5.000000e-01 : f32
    %396 = vector.broadcast %cst_103 : f32 to vector<8x128xf32>
    %397 = arith.mulf %396, %395 : vector<8x128xf32>
    %cst_104 = arith.constant 5.000000e-01 : f32
    %398 = vector.broadcast %cst_104 : f32 to vector<8x128xf32>
    %399 = arith.addf %397, %398 : vector<8x128xf32>
    %400 = arith.select %12, %395, %399 : vector<8x128xi1>, vector<8x128xf32>
    %401 = vector.extract_strided_slice %400 {offsets = [0, 0], sizes = [8, 32], strides = [1, 1]} : vector<8x128xf32> to vector<8x32xf32>
    %402 = vector.extract_strided_slice %400 {offsets = [0, 32], sizes = [8, 32], strides = [1, 1]} : vector<8x128xf32> to vector<8x32xf32>
    %403 = vector.extract_strided_slice %400 {offsets = [0, 64], sizes = [8, 32], strides = [1, 1]} : vector<8x128xf32> to vector<8x32xf32>
    %404 = vector.extract_strided_slice %400 {offsets = [0, 96], sizes = [8, 32], strides = [1, 1]} : vector<8x128xf32> to vector<8x32xf32>
    %405 = arith.mulf %402, %349 : vector<8x32xf32>
    %406 = arith.mulf %401, %403 : vector<8x32xf32>
    %407 = arith.addf %405, %406 : vector<8x32xf32>
    %408 = math.tanh %407 : vector<8x32xf32>
    %409 = arith.mulf %404, %408 : vector<8x32xf32>
    %410 = math.tanh %369 : vector<8x128xf32>
    %cst_105 = arith.constant 5.000000e-01 : f32
    %411 = vector.broadcast %cst_105 : f32 to vector<8x128xf32>
    %412 = arith.mulf %411, %410 : vector<8x128xf32>
    %cst_106 = arith.constant 5.000000e-01 : f32
    %413 = vector.broadcast %cst_106 : f32 to vector<8x128xf32>
    %414 = arith.addf %412, %413 : vector<8x128xf32>
    %415 = arith.select %12, %410, %414 : vector<8x128xi1>, vector<8x128xf32>
    %416 = vector.extract_strided_slice %415 {offsets = [0, 0], sizes = [8, 32], strides = [1, 1]} : vector<8x128xf32> to vector<8x32xf32>
    %417 = vector.extract_strided_slice %415 {offsets = [0, 32], sizes = [8, 32], strides = [1, 1]} : vector<8x128xf32> to vector<8x32xf32>
    %418 = vector.extract_strided_slice %415 {offsets = [0, 64], sizes = [8, 32], strides = [1, 1]} : vector<8x128xf32> to vector<8x32xf32>
    %419 = vector.extract_strided_slice %415 {offsets = [0, 96], sizes = [8, 32], strides = [1, 1]} : vector<8x128xf32> to vector<8x32xf32>
    %420 = arith.mulf %417, %364 : vector<8x32xf32>
    %421 = arith.mulf %416, %418 : vector<8x32xf32>
    %422 = arith.addf %420, %421 : vector<8x32xf32>
    %423 = math.tanh %422 : vector<8x32xf32>
    %424 = arith.mulf %419, %423 : vector<8x32xf32>
    %cst_107 = arith.constant dense<0.000000e+00> : vector<8x128xf32>
    %425 = tpu.matmul %424, %15, %cst_107 {dimension_numbers = #tpu.dot_dimension_numbers<[1], [0], [0], [1], [0, 0, 1, 1], [], []>} : vector<8x32xf32>, vector<32x128xf32>, vector<8x128xf32> -> vector<8x128xf32>
    %cst_108 = arith.constant dense<0.000000e+00> : vector<8x128xf32>
    %426 = tpu.matmul %409, %16, %cst_108 {dimension_numbers = #tpu.dot_dimension_numbers<[1], [0], [0], [1], [0, 0, 1, 1], [], []>} : vector<8x32xf32>, vector<32x128xf32>, vector<8x128xf32> -> vector<8x128xf32>
    %427 = arith.addf %425, %426 : vector<8x128xf32>
    %428 = vector.broadcast %17 : vector<1x128xf32> to vector<8x128xf32>
    %429 = arith.addf %427, %428 : vector<8x128xf32>
    %cst_109 = arith.constant dense<0.000000e+00> : vector<8x128xf32>
    %430 = tpu.matmul %409, %18, %cst_109 {dimension_numbers = #tpu.dot_dimension_numbers<[1], [0], [0], [1], [0, 0, 1, 1], [], []>} : vector<8x32xf32>, vector<32x128xf32>, vector<8x128xf32> -> vector<8x128xf32>
    %cst_110 = arith.constant dense<0.000000e+00> : vector<8x128xf32>
    %431 = tpu.matmul %394, %19, %cst_110 {dimension_numbers = #tpu.dot_dimension_numbers<[1], [0], [0], [1], [0, 0, 1, 1], [], []>} : vector<8x32xf32>, vector<32x128xf32>, vector<8x128xf32> -> vector<8x128xf32>
    %432 = arith.addf %430, %431 : vector<8x128xf32>
    %433 = vector.broadcast %20 : vector<1x128xf32> to vector<8x128xf32>
    %434 = arith.addf %432, %433 : vector<8x128xf32>
    %435 = math.tanh %434 : vector<8x128xf32>
    %cst_111 = arith.constant 5.000000e-01 : f32
    %436 = vector.broadcast %cst_111 : f32 to vector<8x128xf32>
    %437 = arith.mulf %436, %435 : vector<8x128xf32>
    %cst_112 = arith.constant 5.000000e-01 : f32
    %438 = vector.broadcast %cst_112 : f32 to vector<8x128xf32>
    %439 = arith.addf %437, %438 : vector<8x128xf32>
    %440 = arith.select %12, %435, %439 : vector<8x128xi1>, vector<8x128xf32>
    %441 = vector.extract_strided_slice %440 {offsets = [0, 0], sizes = [8, 32], strides = [1, 1]} : vector<8x128xf32> to vector<8x32xf32>
    %442 = vector.extract_strided_slice %440 {offsets = [0, 32], sizes = [8, 32], strides = [1, 1]} : vector<8x128xf32> to vector<8x32xf32>
    %443 = vector.extract_strided_slice %440 {offsets = [0, 64], sizes = [8, 32], strides = [1, 1]} : vector<8x128xf32> to vector<8x32xf32>
    %444 = vector.extract_strided_slice %440 {offsets = [0, 96], sizes = [8, 32], strides = [1, 1]} : vector<8x128xf32> to vector<8x32xf32>
    %445 = arith.mulf %442, %392 : vector<8x32xf32>
    %446 = arith.mulf %441, %443 : vector<8x32xf32>
    %447 = arith.addf %445, %446 : vector<8x32xf32>
    %448 = math.tanh %447 : vector<8x32xf32>
    %449 = arith.mulf %444, %448 : vector<8x32xf32>
    %450 = math.tanh %429 : vector<8x128xf32>
    %cst_113 = arith.constant 5.000000e-01 : f32
    %451 = vector.broadcast %cst_113 : f32 to vector<8x128xf32>
    %452 = arith.mulf %451, %450 : vector<8x128xf32>
    %cst_114 = arith.constant 5.000000e-01 : f32
    %453 = vector.broadcast %cst_114 : f32 to vector<8x128xf32>
    %454 = arith.addf %452, %453 : vector<8x128xf32>
    %455 = arith.select %12, %450, %454 : vector<8x128xi1>, vector<8x128xf32>
    %456 = vector.extract_strided_slice %455 {offsets = [0, 0], sizes = [8, 32], strides = [1, 1]} : vector<8x128xf32> to vector<8x32xf32>
    %457 = vector.extract_strided_slice %455 {offsets = [0, 32], sizes = [8, 32], strides = [1, 1]} : vector<8x128xf32> to vector<8x32xf32>
    %458 = vector.extract_strided_slice %455 {offsets = [0, 64], sizes = [8, 32], strides = [1, 1]} : vector<8x128xf32> to vector<8x32xf32>
    %459 = vector.extract_strided_slice %455 {offsets = [0, 96], sizes = [8, 32], strides = [1, 1]} : vector<8x128xf32> to vector<8x32xf32>
    %460 = arith.mulf %457, %407 : vector<8x32xf32>
    %461 = arith.mulf %456, %458 : vector<8x32xf32>
    %462 = arith.addf %460, %461 : vector<8x32xf32>
    %463 = math.tanh %462 : vector<8x32xf32>
    %464 = arith.mulf %459, %463 : vector<8x32xf32>
    %cst_115 = arith.constant dense<0.000000e+00> : vector<8x128xf32>
    %465 = tpu.matmul %464, %18, %cst_115 {dimension_numbers = #tpu.dot_dimension_numbers<[1], [0], [0], [1], [0, 0, 1, 1], [], []>} : vector<8x32xf32>, vector<32x128xf32>, vector<8x128xf32> -> vector<8x128xf32>
    %cst_116 = arith.constant dense<0.000000e+00> : vector<8x128xf32>
    %466 = tpu.matmul %449, %19, %cst_116 {dimension_numbers = #tpu.dot_dimension_numbers<[1], [0], [0], [1], [0, 0, 1, 1], [], []>} : vector<8x32xf32>, vector<32x128xf32>, vector<8x128xf32> -> vector<8x128xf32>
    %467 = arith.addf %465, %466 : vector<8x128xf32>
    %468 = vector.broadcast %20 : vector<1x128xf32> to vector<8x128xf32>
    %469 = arith.addf %467, %468 : vector<8x128xf32>
    %470 = math.tanh %469 : vector<8x128xf32>
    %cst_117 = arith.constant 5.000000e-01 : f32
    %471 = vector.broadcast %cst_117 : f32 to vector<8x128xf32>
    %472 = arith.mulf %471, %470 : vector<8x128xf32>
    %cst_118 = arith.constant 5.000000e-01 : f32
    %473 = vector.broadcast %cst_118 : f32 to vector<8x128xf32>
    %474 = arith.addf %472, %473 : vector<8x128xf32>
    %475 = arith.select %12, %470, %474 : vector<8x128xi1>, vector<8x128xf32>
    %476 = vector.extract_strided_slice %475 {offsets = [0, 0], sizes = [8, 32], strides = [1, 1]} : vector<8x128xf32> to vector<8x32xf32>
    %477 = vector.extract_strided_slice %475 {offsets = [0, 32], sizes = [8, 32], strides = [1, 1]} : vector<8x128xf32> to vector<8x32xf32>
    %478 = vector.extract_strided_slice %475 {offsets = [0, 64], sizes = [8, 32], strides = [1, 1]} : vector<8x128xf32> to vector<8x32xf32>
    %479 = vector.extract_strided_slice %475 {offsets = [0, 96], sizes = [8, 32], strides = [1, 1]} : vector<8x128xf32> to vector<8x32xf32>
    %480 = arith.mulf %477, %447 : vector<8x32xf32>
    %481 = arith.mulf %476, %478 : vector<8x32xf32>
    %482 = arith.addf %480, %481 : vector<8x32xf32>
    %483 = math.tanh %482 : vector<8x32xf32>
    %484 = arith.mulf %479, %483 : vector<8x32xf32>
    %cst_119 = arith.constant 0.000000e+00 : f32
    %485 = vector.broadcast %cst_119 : f32 to vector<8x32xf32>
    %486 = arith.maximumf %484, %485 : vector<8x32xf32>
    %c0_120 = arith.constant 0 : index
    %c0_121 = arith.constant 0 : index
    %487 = vector.load %arg10[%c0_120, %c0_121] : memref<32x4xf32, #tpu.memory_space<vmem>>, vector<32x4xf32>
    %cst_122 = arith.constant dense<0.000000e+00> : vector<8x4xf32>
    %488 = tpu.matmul %486, %487, %cst_122 {dimension_numbers = #tpu.dot_dimension_numbers<[1], [0], [0], [1], [0, 0, 1, 1], [], []>} : vector<8x32xf32>, vector<32x4xf32>, vector<8x4xf32> -> vector<8x4xf32>
    %c0_123 = arith.constant 0 : index
    %c0_124 = arith.constant 0 : index
    %489 = vector.load %arg11[%c0_123, %c0_124] : memref<1x4xf32, #tpu.memory_space<vmem>>, vector<1x4xf32>
    %490 = vector.broadcast %489 : vector<1x4xf32> to vector<8x4xf32>
    %491 = arith.addf %488, %490 : vector<8x4xf32>
    %c0_125 = arith.constant 0 : index
    %c0_126 = arith.constant 0 : index
    %492 = vector.load %arg12[%c0_125, %c0_126] : memref<8x4xf32, #tpu.memory_space<vmem>>, vector<8x4xf32>
    tpu.vector_store %arg12[%c0_125, %c0_126], %491 {strides = array<i32>} : memref<8x4xf32, #tpu.memory_space<vmem>>, vector<8x4xf32>,
    return
  }
}

</mosaic_0001>

<bundles_post_ra>
// kernel: lstm_model_forward.1
= control target key start
LH: loop header
LB: loop body
LE: loop exit
PB: predicated region body
PF: predicated region fallthrough
CT: control target
= control target key end

     0   :  { %vm57_vm0 = vcmask 64512   ;;  %v4861_v0 = vmov 0.0|0.0   ;;  %vm4862_vm1 = vmmov 0   ;;  %v4863_v4 = vmov 0.0   ;;  %s4864_s17 = smov 64   ;;  %s4865_s18 = smov 32   ;;  %s5652_s2 = inlined_call_operand.vmem [shape: f32[32,128], index: 2, kind: input, shape index: {}]   ;;  %s5653_s1 = inlined_call_operand.vmem [shape: f32[8,128], index: 1, kind: input, shape index: {}]   ;;  %s5654_s0 = inlined_call_operand.vmem [shape: f32[64,8], index: 0, kind: input, shape index: {}]   ;;  %s5655_s3 = inlined_call_operand.vmem [shape: f32[1,128], index: 3, kind: input, shape index: {}]   ;;  %s5656_s5 = inlined_call_operand.vmem [shape: f32[32,128], index: 5, kind: input, shape index: {}]   ;;  %s5657_s4 = inlined_call_operand.vmem [shape: f32[32,128], index: 4, kind: input, shape index: {}]   ;;  %s5658_s6 = inlined_call_operand.vmem [shape: f32[1,128], index: 6, kind: input, shape index: {}]   ;;  %s5659_s7 = inlined_call_operand.vmem [shape: f32[32,128], index: 7, kind: input, shape index: {}]   ;;  %s5660_s8 = inlined_call_operand.vmem [shape: f32[32,128], index: 8, kind: input, shape index: {}]   ;;  %s5661_s9 = inlined_call_operand.vmem [shape: f32[1,128], index: 9, kind: input, shape index: {}]   ;;  %s5662_s10 = inlined_call_operand.vmem [shape: f32[32,4], index: 10, kind: input, shape index: {}]   ;;  %s5663_s11 = inlined_call_operand.vmem [shape: f32[1,4], index: 11, kind: input, shape index: {}]   ;;  %s5664_s12 = inlined_call_operand.vmem [shape: f32[8,4], index: 12, kind: output, shape index: {}]  }
   0x1   :  { %4511 = vmatprep.subr.bf16.mxu1 %v4861_v0  ;;  %v200_v1 = vld [vmem:[%s5652_s2] sm:$0xff]  ;;  %v201_v2 = vld [vmem:[%s5652_s2 + $0x8] sm:$0xff]  ;;  %4068 = vmatprep.mubr.msk.f32.mxu1 %vm4862_vm1, %v4863_v4  ;;  %v202_v8 = vld [vmem:[%s5652_s2 + $0x10] sm:$0xff]  ;;  %v195_v18 = vlaneseq  ;;  %vm223_vm5 = vcmask 261120   ;;  %vm3776_vm6 = vcmask 31744  }
   0x2   :  { %v49_v3 = vld [vmem:[%s5653_s1] sm:$0xff]  ;;  %v4943_v5 = vpack.c.bf16 %v201_v2, %v200_v1  ;;  %v42_v7 = vld [vmem:[%s5654_s0 + $0x8] sm:$0xff]  ;;  %v203_v9 = vld [vmem:[%s5652_s2 + $0x18] sm:$0xff] }
   0x3   :  { %4046 = vmatprep.subr.mxu0 %v49_v3  ;;  %v41_v6 = vld [vmem:[%s5654_s0] sm:$0xff]  ;;  %v4960_v10 = vpack.c.bf16 %v203_v9, %v202_v8  ;;  %v196_v19 = vand.u32 127, %v195_v18  ;;  %v43_v30 = vld [vmem:[%s5654_s0 + $0x10] sm:$0xff]  ;;  %v44_v31 = vld [vmem:[%s5654_s0 + $0x18] sm:$0xff] }
   0x4   :  { %4047 = vmatpush3.msra.mxu0 %v49_v3  ;;  %4048 = vmatprep.mubr.msk.f32.mxu0 %vm57_vm0, %v41_v6  ;;  %v4978_v12 = vld [vmem:[%s5655_s3] ss:$0 sm:$0xff]  ;;  %v209_v34 = vld [vmem:[%s5656_s5 + $0x8] sm:$0xff]  ;;  %v210_v36 = vld [vmem:[%s5656_s5 + $0x10] sm:$0xff] }
   0x5   :  { %4513 = vmatpush3.bf16.msra.mxu1 %v4943_v5  ;;  %4049 = vmatmul.mubr.msk.f32.vlgmr.msra.gmra.mrb[0].mxu0 %vm57_vm0, %v42_v7  ;;  %vm197_vm2 = vcmp.ge.s32.totalorder %v196_v19, 64  ;;  %vm198_vm3 = vcmp.lt.s32.totalorder %v196_v19, 96  ;;  %v45_v32 = vld [vmem:[%s5654_s0 + $0x20] sm:$0xff]  ;;  %v211_v37 = vld [vmem:[%s5656_s5 + $0x18] sm:$0xff]  ;;  %v46_v38 = vld [vmem:[%s5654_s0 + $0x28] sm:$0xff] }
   0x6   :  { %4514 = vmatprep.subr.bf16.mxu1 %v4861_v0  ;;  %4523 = vmatprep.subr.bf16.mxu0 %v4861_v0  ;;  %vm4981_vm4 = vmand %vm197_vm2, %vm198_vm3  ;;  %v208_v33 = vld [vmem:[%s5656_s5] sm:$0xff]  ;;  %v5022_v39 = vpack.c.bf16 %v211_v37, %v210_v36  ;;  %v47_v41 = vld [vmem:[%s5654_s0 + $0x30] sm:$0xff] }
   0x7   :  { %4051 = vmatprep.mubr.msk.f32.mxu0 %vm57_vm0, %v43_v30  ;;  %v5008_v35 = vpack.c.bf16 %v209_v34, %v208_v33  ;;  %v48_v42 = vld [vmem:[%s5654_s0 + $0x38] sm:$0xff]  ;;  %v204_v49 = vld [vmem:[%s5657_s4] sm:$0xff]  ;;  %v205_v50 = vld [vmem:[%s5657_s4 + $0x8] sm:$0xff] }
   0x8   :  { %v5061_v51 = vpack.c.bf16 %v205_v50, %v204_v49  ;;  %v206_v52 = vld [vmem:[%s5657_s4 + $0x10] sm:$0xff]  ;;  %v207_v53 = vld [vmem:[%s5657_s4 + $0x18] sm:$0xff]  ;;  %v5094_v1 = vld [vmem:[%s5658_s6] ss:$0 sm:$0xff] }
   0x9   :  { %4516 = vmatpush3.bf16.msra.mxu1 %v4960_v10  ;;  %4052 = vmatmul.mubr.msk.f32.gmra.mrb[2].mxu0 %vm57_vm0, %v44_v31  ;;  %v5071_v55 = vpack.c.bf16 %v207_v53, %v206_v52  ;;  %v213_v37 = vld [vmem:[%s5659_s7] sm:$0xff]  ;;  %v219_v50 = vld [vmem:[%s5660_s8 + $0x10] sm:$0xff]  ;;  %v220_v52 = vld [vmem:[%s5660_s8 + $0x18] sm:$0xff] }
   0xa   :  { %4517 = vmatprep.subr.bf16.mxu1 %v4861_v0  ;;  %4054 = vmatprep.mubr.msk.f32.mxu0 %vm57_vm0, %v45_v32  ;;  %v3692_v22 = vld [vmem:[%s5662_s10 + $0x10] sm:$0xff] }
   0xb   :  { %4525 = vmatpush3.bf16.msra.mxu0 %v5008_v35 }
   0xc   :  { %4069 = vmatmul.mubr.f32.vlgmr.msra.gmra.mrb[0].mxu1 %v4863_v4  ;;  %4526 = vmatprep.subr.bf16.mxu0 %v4861_v0 }
   0xd   :  { %4519 = vmatpush3.bf16.msra.mxu1 %v4943_v5  ;;  %4079 = vmatprep.mubr.msk.f32.mxu1 %vm4862_vm1, %v4863_v4 }
   0xe   :  { %4520 = vmatprep.subr.bf16.mxu1 %v4861_v0  ;;  %4055 = vmatmul.mubr.msk.f32.gmra.mrb[4].mxu0 %vm57_vm0, %v46_v38  ;;  %v214_v38 = vld [vmem:[%s5659_s7 + $0x8] sm:$0xff] }
   0xf   :  { %4528 = vmatpush3.bf16.msra.mxu0 %v5022_v39  ;;  %4057 = vmatprep.mubr.msk.f32.mxu0 %vm57_vm0, %v47_v41  ;;  %v218_v41 = vld [vmem:[%s5660_s8 + $0x8] sm:$0xff] }
  0x10   :  { %4535 = vmatprep.subr.bf16.mxu0 %v4861_v0 }
  0x11   :  { %4522 = vmatpush3.bf16.msra.mxu1 %v4960_v10 }
  0x12   :  { %4529 = vmatprep.subr.bf16.mxu1 %v4861_v0  ;;  %4058 = vmatmul.mubr.msk.f32.gmra.mrb[6].mxu0 %vm57_vm0, %v48_v42  ;;  %v5134_v42 = vpack.c.bf16 %v214_v38, %v213_v37 }
  0x13   :  { %4090 = vmatprep.mubr.msk.f32.mxu0 %vm4862_vm1, %v4863_v4 }
  0x16   :  { %4091 = vmatmul.mubr.f32.vlgmr.msra.gmra.mrb[8].mxu0 %v4863_v4 }
  0x17   :  { %4537 = vmatpush3.bf16.msra.mxu0 %v4943_v5  ;;  %4112 = vmatprep.mubr.msk.f32.mxu0 %vm4862_vm1, %v4863_v4 }
  0x18   :  { %4538 = vmatprep.subr.bf16.mxu0 %v4861_v0 }
  0x1b   :  { %4540 = vmatpush3.bf16.msra.mxu0 %v4960_v10 }
  0x1c   :  { %4547 = vmatprep.subr.bf16.mxu0 %v4861_v0 }
  0xd8   :  { %v4973_v11 = vpop.f32.mrb[0].mxu0 }
  0xd9   :  { %v148_v13 = vpop.f32.mrb[1].mxu0  ;;  %v154_v60 = vadd.f32 %v4973_v11, %v4978_v12 }
  0xda   :  { %v149_v14 = vadd.f32 %v4978_v12, %v148_v13 }
  0xdc   :  { %v5047_v45 = vpop.f32.mrb[2].mxu0 }
  0xdd   :  { %v5049_v46 = vpop.f32.mrb[3].mxu0 }
  0xdf   :  { %v293_v15 = vpop.f32.mrb[0].mxu1 }
  0xe0   :  { %v297_v16 = vadd.f32 %v293_v15, %v149_v14  ;;  %v4070_v17 = vpop.f32.mrb[1].mxu1 }
  0xe1   :  { %v5051_v47 = vpop.f32.mrb[4].mxu0 }
  0xe2   :  { %4762 = vtanh.f32 %v297_v16  ;;  %v5053_v48 = vpop.f32.mrb[5].mxu0 }
  0xe5   :  { %v5085_v56 = vpop.f32.mrb[6].mxu0 }
  0xe6   :  { %v5087_v57 = vpop.f32.mrb[7].mxu0 }
  0xe9   :  { %v462_v58 = vpop.f32.mrb[8].mxu0 }
  0xea   :  { %v4092_v59 = vpop.f32.mrb[9].mxu0 }
  0xeb   :  { %v159_v59 = vadd.f32 %v4978_v12, %v5049_v46  ;;  %v5189_v46 = vld [vmem:[%s5661_s9] ss:$0 sm:$0xff] }
  0xec   :  { %v4763_v20 = vpop.eup %4762 }
  0xed   :  { %v299_v21 = vmul.f32 0.5, %v4763_v20 }
  0xef   :  { %v300_v23 = vadd.f32 0.5, %v299_v21 }
  0xf1   :  { %v301_v24 = vsel %vm4981_vm4, %v4763_v20, %v300_v23 }
  0xf2   :  { %304 = vrot.lane.b32.xlu0 %v301_v24, %s4864_s17  ;;  %v302_v27 = vmul.f32 0.0, %v301_v24 }
 0x164   :  { %v305_v25 = vpop.permute.xlu0 %304 }
 0x165   :  { %v307_v26 = vmul.f32 %v305_v25, %v301_v24 }
 0x167   :  { %309 = vrot.lane.b32.xlu0 %v307_v26, %s4865_s18 }
 0x1d9   :  { %v310_v28 = vpop.permute.xlu0 %309 }
 0x1da   :  { %v4989_v29 = vadd.f32 %v310_v28, %v302_v27 }
 0x1dc   :  { %4764 = vtanh.f32 %v4989_v29 }
 0x1e6   :  { %v4765_v40 = vpop.eup %4764 }
 0x1e7   :  { %315 = vrot.lane.b32.xlu1 %v4765_v40, %s4864_s17  ;;  %v217_v40 = vld [vmem:[%s5660_s8] sm:$0xff] }
 0x1e8   :  { %v5143_v49 = vpack.c.bf16 %v218_v41, %v217_v40 }
 0x259   :  { %v316_v43 = vpop.permute.xlu1 %315 }
 0x25a   :  { %v318_v44 = vmul.f32 %v316_v43, %v301_v24  ;;  %v215_v43 = vld [vmem:[%s5659_s7 + $0x10] sm:$0xff] }
 0x25c   :  { %321 = vrot.lane.b32.xlu1 %v318_v44, %s4865_s18  ;;  %v216_v44 = vld [vmem:[%s5659_s7 + $0x18] sm:$0xff] }
 0x2ce   :  { %v322_v54 = vpop.permute.xlu1 %321 }
 0x2cf   :  { %4080 = vmatmul.mubr.msk.f32.vlgmr.msra.gmra.mrb[2].mxu1 %vm223_vm5, %v322_v54 }
 0x2d0   :  { %4531 = vmatpush3.bf16.msra.mxu1 %v5061_v51  ;;  %4101 = vmatprep.mubr.msk.f32.mxu1 %vm4862_vm1, %v4863_v4 }
 0x2d1   :  { %4532 = vmatprep.subr.bf16.mxu1 %v4861_v0 }
 0x2d4   :  { %4534 = vmatpush3.bf16.msra.mxu1 %v5071_v55 }
 0x2d5   :  { %4541 = vmatprep.subr.bf16.mxu1 %v4861_v0 }
 0x2d7   :  { %4102 = vmatmul.mubr.msk.f32.vlgmr.msra.gmra.mrb[4].mxu1 %vm223_vm5, %v322_v54  ;;  %v5153_v54 = vpack.c.bf16 %v216_v44, %v215_v43 }
 0x2d8   :  { %4543 = vmatpush3.bf16.msra.mxu1 %v5008_v35  ;;  %4123 = vmatprep.mubr.msk.f32.mxu1 %vm4862_vm1, %v4863_v4 }
 0x2d9   :  { %4544 = vmatprep.subr.bf16.mxu1 %v4861_v0 }
 0x2dc   :  { %4546 = vmatpush3.bf16.msra.mxu1 %v5022_v39 }
 0x2dd   :  { %4553 = vmatprep.subr.bf16.mxu1 %v4861_v0 }
 0x3a2   :  { %v391_v61 = vpop.f32.mrb[2].mxu1 }
 0x3a3   :  { %v395_v62 = vadd.f32 %v391_v61, %v154_v60  ;;  %v4081_v63 = vpop.f32.mrb[3].mxu1 }
 0x3a5   :  { %4766 = vtanh.f32 %v395_v62 }
 0x3aa   :  { %v532_v2 = vpop.f32.mrb[4].mxu1 }
 0x3ab   :  { %v533_v3 = vadd.f32 %v532_v2, %v462_v58  ;;  %v4103_v6 = vpop.f32.mrb[5].mxu1  ;;  %v5160_v58 = vpack.c.bf16 %v220_v52, %v219_v50 }
 0x3ad   :  { %v542_v7 = vadd.f32 %v5094_v1, %v533_v3 }
 0x3af   :  { %v4767_v8 = vpop.eup %4766  ;;  %4768 = vtanh.f32 %v542_v7 }
 0x3b0   :  { %v565_v9 = vmul.f32 0.5, %v4767_v8 }
 0x3b2   :  { %v566_v13 = vadd.f32 0.5, %v565_v9 }
 0x3b4   :  { %v567_v11 = vsel %vm4981_vm4, %v4767_v8, %v566_v13 }
 0x3b5   :  { %570 = vrot.lane.b32.xlu0 %v567_v11, %s4864_s17  ;;  %v568_v23 = vmul.f32 %v567_v11, %v4989_v29 }
 0x3b9   :  { %v4769_v14 = vpop.eup %4768 }
 0x3ba   :  { %v544_v15 = vmul.f32 0.5, %v4769_v14 }
 0x3bc   :  { %v545_v16 = vadd.f32 0.5, %v544_v15 }
 0x3be   :  { %v546_v17 = vsel %vm4981_vm4, %v4769_v14, %v545_v16 }
 0x3bf   :  { %549 = vrot.lane.b32.xlu1 %v546_v17, %s4864_s17  ;;  %v547_v26 = vmul.f32 0.0, %v546_v17 }
 0x427   :  { %v571_v18 = vpop.permute.xlu0 %570 }
 0x428   :  { %v573_v19 = vmul.f32 %v571_v18, %v567_v11 }
 0x42a   :  { %575 = vrot.lane.b32.xlu0 %v573_v19, %s4865_s18 }
 0x431   :  { %v550_v20 = vpop.permute.xlu1 %549 }
 0x432   :  { %v552_v21 = vmul.f32 %v550_v20, %v546_v17 }
 0x434   :  { %554 = vrot.lane.b32.xlu1 %v552_v21, %s4865_s18 }
 0x49c   :  { %v576_v24 = vpop.permute.xlu0 %575 }
 0x49d   :  { %v5106_v25 = vadd.f32 %v576_v24, %v568_v23 }
 0x49f   :  { %4770 = vtanh.f32 %v5106_v25 }
 0x4a6   :  { %v555_v27 = vpop.permute.xlu1 %554 }
 0x4a7   :  { %v5109_v28 = vadd.f32 %v555_v27, %v547_v26 }
 0x4a9   :  { %v4771_v30 = vpop.eup %4770  ;;  %4772 = vtanh.f32 %v5109_v28 }
 0x4aa   :  { %581 = vrot.lane.b32.xlu0 %v4771_v30, %s4864_s17 }
 0x4b3   :  { %v4773_v31 = vpop.eup %4772 }
 0x4b4   :  { %560 = vrot.lane.b32.xlu1 %v4773_v31, %s4864_s17 }
 0x51c   :  { %v582_v32 = vpop.permute.xlu0 %581 }
 0x51d   :  { %v584_v33 = vmul.f32 %v582_v32, %v567_v11 }
 0x51f   :  { %587 = vrot.lane.b32.xlu0 %v584_v33, %s4865_s18 }
 0x526   :  { %v561_v29 = vpop.permute.xlu1 %560 }
 0x527   :  { %v563_v34 = vmul.f32 %v561_v29, %v546_v17 }
 0x529   :  { %663 = vrot.lane.b32.xlu1 %v563_v34, %s4865_s18 }
 0x591   :  { %v588_v36 = vpop.permute.xlu0 %587 }
 0x592   :  { %4113 = vmatmul.mubr.msk.f32.vlgmr.msra.gmra.mrb[10].mxu0 %vm223_vm5, %v588_v36 }
 0x593   :  { %4549 = vmatpush3.bf16.msra.mxu0 %v5061_v51  ;;  %4134 = vmatprep.mubr.msk.f32.mxu0 %vm4862_vm1, %v4863_v4 }
 0x594   :  { %4550 = vmatprep.subr.bf16.mxu0 %v4861_v0 }
 0x597   :  { %4552 = vmatpush3.bf16.msra.mxu0 %v5071_v55 }
 0x598   :  { %4559 = vmatprep.subr.bf16.mxu0 %v4861_v0 }
 0x59a   :  { %4135 = vmatmul.mubr.msk.f32.vlgmr.msra.gmra.mrb[12].mxu0 %vm223_vm5, %v588_v36 }
 0x59b   :  { %4561 = vmatpush3.bf16.msra.mxu0 %v5134_v42  ;;  %v664_v53 = vpop.permute.xlu1 %663  ;;  %4156 = vmatprep.mubr.msk.f32.mxu0 %vm4862_vm1, %v4863_v4 }
 0x59c   :  { %4124 = vmatmul.mubr.msk.f32.vlgmr.msra.gmra.mrb[6].mxu1 %vm223_vm5, %v664_v53  ;;  %4562 = vmatprep.subr.bf16.mxu0 %v4861_v0 }
 0x59d   :  { %4555 = vmatpush3.bf16.msra.mxu1 %v5143_v49  ;;  %4145 = vmatprep.mubr.msk.f32.mxu1 %vm4862_vm1, %v4863_v4 }
 0x59e   :  { %4556 = vmatprep.subr.bf16.mxu1 %v4861_v0 }
 0x59f   :  { %4564 = vmatpush3.bf16.msra.mxu0 %v5153_v54 }
 0x5a0   :  { %4571 = vmatprep.subr.bf16.mxu0 %v4861_v0 }
 0x5a1   :  { %4558 = vmatpush3.bf16.msra.mxu1 %v5160_v58 }
 0x5a2   :  { %4157 = vmatmul.mubr.msk.f32.vlgmr.msra.gmra.mrb[14].mxu0 %vm223_vm5, %v664_v53  ;;  %4565 = vmatprep.subr.bf16.mxu1 %v4861_v0 }
 0x5a3   :  { %4573 = vmatpush3.bf16.msra.mxu0 %v5008_v35  ;;  %4178 = vmatprep.mubr.msk.f32.mxu0 %vm4862_vm1, %v4863_v4 }
 0x5a4   :  { %4146 = vmatmul.mubr.f32.vlgmr.msra.gmra.mrb[8].mxu1 %v4863_v4  ;;  %4574 = vmatprep.subr.bf16.mxu0 %v4861_v0 }
 0x5a5   :  { %4567 = vmatpush3.bf16.msra.mxu1 %v4943_v5  ;;  %4167 = vmatprep.mubr.msk.f32.mxu1 %vm4862_vm1, %v4863_v4 }
 0x5a6   :  { %4568 = vmatprep.subr.bf16.mxu1 %v4861_v0 }
 0x5a7   :  { %4576 = vmatpush3.bf16.msra.mxu0 %v5022_v39 }
 0x5a8   :  { %4583 = vmatprep.subr.bf16.mxu0 %v4861_v0 }
 0x5a9   :  { %4570 = vmatpush3.bf16.msra.mxu1 %v4960_v10 }
 0x5aa   :  { %4577 = vmatprep.subr.bf16.mxu1 %v4861_v0 }
 0x665   :  { %v657_v60 = vpop.f32.mrb[10].mxu0 }
 0x666   :  { %v661_v61 = vadd.f32 %v657_v60, %v159_v59  ;;  %v4114_v62 = vpop.f32.mrb[11].mxu0 }
 0x668   :  { %4774 = vtanh.f32 %v661_v61 }
 0x66d   :  { %v803_v63 = vpop.f32.mrb[12].mxu0 }
 0x66e   :  { %v4136_v2 = vpop.f32.mrb[13].mxu0 }
 0x66f   :  { %v733_v3 = vpop.f32.mrb[6].mxu1 }
 0x670   :  { %v804_v6 = vadd.f32 %v803_v63, %v733_v3  ;;  %v4125_v7 = vpop.f32.mrb[7].mxu1 }
 0x672   :  { %v4775_v8 = vpop.eup %4774  ;;  %v807_v9 = vadd.f32 %v5094_v1, %v804_v6 }
 0x673   :  { %v998_v13 = vmul.f32 0.5, %v4775_v8 }
 0x674   :  { %4776 = vtanh.f32 %v807_v9 }
 0x675   :  { %v944_v11 = vpop.f32.mrb[14].mxu0  ;;  %v999_v14 = vadd.f32 0.5, %v998_v13 }
 0x676   :  { %v4158_v15 = vpop.f32.mrb[15].mxu0 }
 0x677   :  { %v874_v16 = vpop.f32.mrb[8].mxu1  ;;  %v1000_v17 = vsel %vm4981_vm4, %v4775_v8, %v999_v14 }
 0x678   :  { %v945_v18 = vadd.f32 %v944_v11, %v874_v16  ;;  %v4147_v19 = vpop.f32.mrb[9].mxu1  ;;  %1003 = vrot.lane.b32.xlu0 %v1000_v17, %s4864_s17  ;;  %v1001_v40 = vmul.f32 %v1000_v17, %v5106_v25  ;;  %v164_v11 = vadd.f32 %v5047_v45, %v4978_v12 }
 0x67a   :  { %v954_v20 = vadd.f32 %v5189_v46, %v945_v18 }
 0x67c   :  { %4778 = vtanh.f32 %v954_v20 }
 0x67e   :  { %v4777_v21 = vpop.eup %4776 }
 0x67f   :  { %v977_v23 = vmul.f32 0.5, %v4777_v21 }
 0x681   :  { %v978_v24 = vadd.f32 0.5, %v977_v23 }
 0x683   :  { %v979_v26 = vsel %vm4981_vm4, %v4777_v21, %v978_v24 }
 0x684   :  { %982 = vrot.lane.b32.xlu1 %v979_v26, %s4864_s17  ;;  %v980_v44 = vmul.f32 %v979_v26, %v5109_v28 }
 0x686   :  { %v4779_v27 = vpop.eup %4778 }
 0x687   :  { %v956_v30 = vmul.f32 0.5, %v4779_v27 }
 0x689   :  { %v957_v31 = vadd.f32 0.5, %v956_v30 }
 0x68b   :  { %v958_v32 = vsel %vm4981_vm4, %v4779_v27, %v957_v31 }
 0x68c   :  { %961 = vrot.lane.b32.xlu0 %v958_v32, %s4864_s17  ;;  %v959_v59 = vmul.f32 0.0, %v958_v32 }
 0x6ea   :  { %v1004_v33 = vpop.permute.xlu0 %1003 }
 0x6eb   :  { %v1006_v29 = vmul.f32 %v1004_v33, %v1000_v17 }
 0x6ed   :  { %1008 = vrot.lane.b32.xlu1 %v1006_v29, %s4865_s18 }
 0x6f6   :  { %v983_v34 = vpop.permute.xlu1 %982 }
 0x6f7   :  { %v985_v36 = vmul.f32 %v983_v34, %v979_v26 }
 0x6f9   :  { %987 = vrot.lane.b32.xlu0 %v985_v36, %s4865_s18 }
 0x6fe   :  { %v962_v37 = vpop.permute.xlu0 %961 }
 0x6ff   :  { %v964_v38 = vmul.f32 %v962_v37, %v958_v32 }
 0x701   :  { %966 = vrot.lane.b32.xlu1 %v964_v38, %s4865_s18 }
 0x75f   :  { %v1009_v41 = vpop.permute.xlu1 %1008 }
 0x760   :  { %v5205_v43 = vadd.f32 %v1009_v41, %v1001_v40 }
 0x762   :  { %4780 = vtanh.f32 %v5205_v43 }
 0x76b   :  { %v988_v50 = vpop.permute.xlu0 %987 }
 0x76c   :  { %v4781_v52 = vpop.eup %4780  ;;  %v5209_v53 = vadd.f32 %v988_v50, %v980_v44 }
 0x76d   :  { %1014 = vrot.lane.b32.xlu0 %v4781_v52, %s4864_s17 }
 0x76e   :  { %4782 = vtanh.f32 %v5209_v53 }
 0x773   :  { %v967_v60 = vpop.permute.xlu1 %966 }
 0x774   :  { %v5213_v61 = vadd.f32 %v967_v60, %v959_v59 }
 0x776   :  { %4784 = vtanh.f32 %v5213_v61 }
 0x778   :  { %v4783_v25 = vpop.eup %4782 }
 0x779   :  { %993 = vrot.lane.b32.xlu1 %v4783_v25, %s4864_s17 }
 0x780   :  { %v4785_v62 = vpop.eup %4784 }
 0x781   :  { %972 = vrot.lane.b32.xlu0 %v4785_v62, %s4864_s17 }
 0x7df   :  { %v1015_v28 = vpop.permute.xlu0 %1014 }
 0x7e0   :  { %v1017_v63 = vmul.f32 %v1015_v28, %v1000_v17 }
 0x7e2   :  { %1020 = vrot.lane.b32.xlu1 %v1017_v63, %s4865_s18 }
 0x7eb   :  { %v994_v2 = vpop.permute.xlu1 %993 }
 0x7ec   :  { %v996_v3 = vmul.f32 %v994_v2, %v979_v26 }
 0x7ee   :  { %1096 = vrot.lane.b32.xlu0 %v996_v3, %s4865_s18 }
 0x7f3   :  { %v973_v6 = vpop.permute.xlu0 %972 }
 0x7f4   :  { %v975_v7 = vmul.f32 %v973_v6, %v958_v32 }
 0x7f6   :  { %1242 = vrot.lane.b32.xlu1 %v975_v7, %s4865_s18 }
 0x854   :  { %v1021_v8 = vpop.permute.xlu1 %1020 }
 0x855   :  { %4168 = vmatmul.mubr.msk.f32.vlgmr.msra.gmra.mrb[10].mxu1 %vm223_vm5, %v1021_v8 }
 0x856   :  { %4579 = vmatpush3.bf16.msra.mxu1 %v5061_v51  ;;  %4189 = vmatprep.mubr.msk.f32.mxu1 %vm4862_vm1, %v4863_v4 }
 0x857   :  { %4580 = vmatprep.subr.bf16.mxu1 %v4861_v0 }
 0x85a   :  { %4582 = vmatpush3.bf16.msra.mxu1 %v5071_v55 }
 0x85b   :  { %4589 = vmatprep.subr.bf16.mxu1 %v4861_v0 }
 0x85d   :  { %4190 = vmatmul.mubr.msk.f32.vlgmr.msra.gmra.mrb[12].mxu1 %vm223_vm5, %v1021_v8 }
 0x85e   :  { %4591 = vmatpush3.bf16.msra.mxu1 %v5134_v42  ;;  %4211 = vmatprep.mubr.msk.f32.mxu1 %vm4862_vm1, %v4863_v4 }
 0x85f   :  { %4592 = vmatprep.subr.bf16.mxu1 %v4861_v0 }
 0x860   :  { %v1097_v9 = vpop.permute.xlu0 %1096 }
 0x861   :  { %4179 = vmatmul.mubr.msk.f32.vlgmr.msra.gmra.mrb[16].mxu0 %vm223_vm5, %v1097_v9 }
 0x862   :  { %4585 = vmatpush3.bf16.msra.mxu0 %v5143_v49  ;;  %4594 = vmatpush3.bf16.msra.mxu1 %v5153_v54 }
 0x863   :  { %4586 = vmatprep.subr.bf16.mxu0 %v4861_v0  ;;  %4200 = vmatprep.mubr.msk.f32.mxu0 %vm4862_vm1, %v4863_v4 }
 0x864   :  { %4601 = vmatprep.subr.bf16.mxu1 %v4861_v0 }
 0x865   :  { %4212 = vmatmul.mubr.msk.f32.vlgmr.msra.gmra.mrb[14].mxu1 %vm223_vm5, %v1097_v9 }
 0x866   :  { %4588 = vmatpush3.bf16.msra.mxu0 %v5160_v58  ;;  %4603 = vmatpush3.bf16.msra.mxu1 %v5008_v35 }
 0x867   :  { %4595 = vmatprep.subr.bf16.mxu0 %v4861_v0  ;;  %4604 = vmatprep.subr.bf16.mxu1 %v4861_v0 }
 0x868   :  { %v1243_v13 = vpop.permute.xlu1 %1242  ;;  %4233 = vmatprep.mubr.msk.f32.mxu1 %vm4862_vm1, %v4863_v4 }
 0x869   :  { %4201 = vmatmul.mubr.msk.f32.vlgmr.msra.gmra.mrb[18].mxu0 %vm223_vm5, %v1243_v13 }
 0x86a   :  { %4597 = vmatpush3.bf16.msra.mxu0 %v4943_v5  ;;  %4222 = vmatprep.mubr.msk.f32.mxu0 %vm4862_vm1, %v4863_v4 }
 0x86b   :  { %4598 = vmatprep.subr.bf16.mxu0 %v4861_v0  ;;  %4606 = vmatpush3.bf16.msra.mxu1 %v5022_v39 }
 0x86c   :  { %4613 = vmatprep.subr.bf16.mxu1 %v4861_v0 }
 0x86e   :  { %4600 = vmatpush3.bf16.msra.mxu0 %v4960_v10 }
 0x86f   :  { %4607 = vmatprep.subr.bf16.mxu0 %v4861_v0 }
 0x928   :  { %v1090_v14 = vpop.f32.mrb[10].mxu1 }
 0x929   :  { %v1094_v15 = vadd.f32 %v1090_v14, %v164_v11  ;;  %v4169_v16 = vpop.f32.mrb[11].mxu1 }
 0x92b   :  { %4786 = vtanh.f32 %v1094_v15 }
 0x930   :  { %v1236_v17 = vpop.f32.mrb[12].mxu1 }
 0x931   :  { %v4191_v18 = vpop.f32.mrb[13].mxu1 }
 0x934   :  { %v1166_v19 = vpop.f32.mrb[16].mxu0 }
 0x935   :  { %v4787_v20 = vpop.eup %4786  ;;  %v1237_v21 = vadd.f32 %v1236_v17, %v1166_v19  ;;  %v4180_v23 = vpop.f32.mrb[17].mxu0 }
 0x936   :  { %v1430_v24 = vmul.f32 0.5, %v4787_v20 }
 0x937   :  { %v1240_v26 = vadd.f32 %v5094_v1, %v1237_v21 }
 0x938   :  { %v1382_v27 = vpop.f32.mrb[14].mxu1  ;;  %v1431_v30 = vadd.f32 0.5, %v1430_v24 }
 0x939   :  { %4788 = vtanh.f32 %v1240_v26  ;;  %v4213_v31 = vpop.f32.mrb[15].mxu1  ;;  %v169_v26 = vadd.f32 %v4978_v12, %v5053_v48 }
 0x93a   :  { %v1432_v45 = vsel %vm4981_vm4, %v4787_v20, %v1431_v30 }
 0x93b   :  { %1435 = vrot.lane.b32.xlu0 %v1432_v45, %s4864_s17  ;;  %v1433_v2 = vmul.f32 %v1432_v45, %v5205_v43 }
 0x93c   :  { %v1312_v32 = vpop.f32.mrb[18].mxu0 }
 0x93d   :  { %v1383_v33 = vadd.f32 %v1382_v27, %v1312_v32  ;;  %v4202_v29 = vpop.f32.mrb[19].mxu0 }
 0x93f   :  { %v1386_v34 = vadd.f32 %v5189_v46, %v1383_v33 }
 0x941   :  { %4790 = vtanh.f32 %v1386_v34 }
 0x943   :  { %v4789_v36 = vpop.eup %4788 }
 0x944   :  { %v1409_v37 = vmul.f32 0.5, %v4789_v36 }
 0x946   :  { %v1410_v38 = vadd.f32 0.5, %v1409_v37 }
 0x948   :  { %v1411_v40 = vsel %vm4981_vm4, %v4789_v36, %v1410_v38 }
 0x949   :  { %1414 = vrot.lane.b32.xlu1 %v1411_v40, %s4864_s17  ;;  %v1412_v8 = vmul.f32 %v1411_v40, %v5209_v53 }
 0x94b   :  { %v4791_v41 = vpop.eup %4790 }
 0x94c   :  { %v1388_v44 = vmul.f32 0.5, %v4791_v41 }
 0x94e   :  { %v1389_v50 = vadd.f32 0.5, %v1388_v44 }
 0x950   :  { %v1390_v52 = vsel %vm4981_vm4, %v4791_v41, %v1389_v50 }
 0x951   :  { %1393 = vrot.lane.b32.xlu0 %v1390_v52, %s4864_s17  ;;  %v1391_v11 = vmul.f32 %v1390_v52, %v5213_v61 }
 0x9ad   :  { %v1436_v59 = vpop.permute.xlu0 %1435 }
 0x9ae   :  { %v1438_v60 = vmul.f32 %v1436_v59, %v1432_v45 }
 0x9b0   :  { %1440 = vrot.lane.b32.xlu1 %v1438_v60, %s4865_s18 }
 0x9bb   :  { %v1415_v25 = vpop.permute.xlu1 %1414 }
 0x9bc   :  { %v1417_v62 = vmul.f32 %v1415_v25, %v1411_v40 }
 0x9be   :  { %1419 = vrot.lane.b32.xlu0 %v1417_v62, %s4865_s18 }
 0x9c3   :  { %v1394_v28 = vpop.permute.xlu0 %1393 }
 0x9c4   :  { %v1396_v63 = vmul.f32 %v1394_v28, %v1390_v52 }
 0x9c6   :  { %1398 = vrot.lane.b32.xlu1 %v1396_v63, %s4865_s18 }
 0xa22   :  { %v1441_v3 = vpop.permute.xlu1 %1440 }
 0xa23   :  { %v5273_v6 = vadd.f32 %v1441_v3, %v1433_v2 }
 0xa25   :  { %4792 = vtanh.f32 %v5273_v6 }
 0xa2f   :  { %v4793_v7 = vpop.eup %4792 }
 0xa30   :  { %v1420_v9 = vpop.permute.xlu0 %1419  ;;  %1446 = vrot.lane.b32.xlu0 %v4793_v7, %s4864_s17 }
 0xa31   :  { %v5278_v13 = vadd.f32 %v1420_v9, %v1412_v8 }
 0xa33   :  { %4794 = vtanh.f32 %v5278_v13 }
 0xa38   :  { %v1399_v14 = vpop.permute.xlu1 %1398 }
 0xa39   :  { %v5282_v15 = vadd.f32 %v1399_v14, %v1391_v11 }
 0xa3b   :  { %4796 = vtanh.f32 %v5282_v15 }
 0xa3d   :  { %v4795_v43 = vpop.eup %4794 }
 0xa3e   :  { %1425 = vrot.lane.b32.xlu1 %v4795_v43, %s4864_s17 }
 0xa45   :  { %v4797_v16 = vpop.eup %4796 }
 0xa46   :  { %1404 = vrot.lane.b32.xlu0 %v4797_v16, %s4864_s17 }
 0xaa2   :  { %v1447_v53 = vpop.permute.xlu0 %1446 }
 0xaa3   :  { %v1449_v17 = vmul.f32 %v1447_v53, %v1432_v45 }
 0xaa5   :  { %1452 = vrot.lane.b32.xlu1 %v1449_v17, %s4865_s18 }
 0xab0   :  { %v1426_v18 = vpop.permute.xlu1 %1425 }
 0xab1   :  { %v1428_v19 = vmul.f32 %v1426_v18, %v1411_v40 }
 0xab3   :  { %1528 = vrot.lane.b32.xlu0 %v1428_v19, %s4865_s18 }
 0xab8   :  { %v1405_v61 = vpop.permute.xlu0 %1404 }
 0xab9   :  { %v1407_v20 = vmul.f32 %v1405_v61, %v1390_v52 }
 0xabb   :  { %1674 = vrot.lane.b32.xlu1 %v1407_v20, %s4865_s18 }
 0xb17   :  { %v1453_v21 = vpop.permute.xlu1 %1452 }
 0xb18   :  { %4223 = vmatmul.mubr.msk.f32.vlgmr.msra.gmra.mrb[20].mxu0 %vm223_vm5, %v1453_v21 }
 0xb19   :  { %4609 = vmatpush3.bf16.msra.mxu0 %v5061_v51  ;;  %4244 = vmatprep.mubr.msk.f32.mxu0 %vm4862_vm1, %v4863_v4 }
 0xb1a   :  { %4610 = vmatprep.subr.bf16.mxu0 %v4861_v0 }
 0xb1d   :  { %4612 = vmatpush3.bf16.msra.mxu0 %v5071_v55 }
 0xb1e   :  { %4619 = vmatprep.subr.bf16.mxu0 %v4861_v0 }
 0xb20   :  { %4245 = vmatmul.mubr.msk.f32.vlgmr.msra.gmra.mrb[22].mxu0 %vm223_vm5, %v1453_v21 }
 0xb21   :  { %4621 = vmatpush3.bf16.msra.mxu0 %v5134_v42  ;;  %4266 = vmatprep.mubr.msk.f32.mxu0 %vm4862_vm1, %v4863_v4 }
 0xb22   :  { %4622 = vmatprep.subr.bf16.mxu0 %v4861_v0 }
 0xb25   :  { %4624 = vmatpush3.bf16.msra.mxu0 %v5153_v54  ;;  %v1529_v23 = vpop.permute.xlu0 %1528 }
 0xb26   :  { %4234 = vmatmul.mubr.msk.f32.vlgmr.msra.gmra.mrb[16].mxu1 %vm223_vm5, %v1529_v23  ;;  %4631 = vmatprep.subr.bf16.mxu0 %v4861_v0 }
 0xb27   :  { %4615 = vmatpush3.bf16.msra.mxu1 %v5143_v49  ;;  %4255 = vmatprep.mubr.msk.f32.mxu1 %vm4862_vm1, %v4863_v4 }
 0xb28   :  { %4267 = vmatmul.mubr.msk.f32.vlgmr.msra.gmra.mrb[24].mxu0 %vm223_vm5, %v1529_v23  ;;  %4616 = vmatprep.subr.bf16.mxu1 %v4861_v0 }
 0xb29   :  { %4633 = vmatpush3.bf16.msra.mxu0 %v5008_v35  ;;  %4288 = vmatprep.mubr.msk.f32.mxu0 %vm4862_vm1, %v4863_v4 }
 0xb2a   :  { %4634 = vmatprep.subr.bf16.mxu0 %v4861_v0 }
 0xb2b   :  { %4618 = vmatpush3.bf16.msra.mxu1 %v5160_v58 }
 0xb2c   :  { %4625 = vmatprep.subr.bf16.mxu1 %v4861_v0 }
 0xb2d   :  { %v1675_v24 = vpop.permute.xlu1 %1674  ;;  %4636 = vmatpush3.bf16.msra.mxu0 %v5022_v39 }
 0xb2e   :  { %4256 = vmatmul.mubr.msk.f32.vlgmr.msra.gmra.mrb[18].mxu1 %vm223_vm5, %v1675_v24  ;;  %4643 = vmatprep.subr.bf16.mxu0 %v4861_v0 }
 0xb2f   :  { %4627 = vmatpush3.bf16.msra.mxu1 %v4943_v5  ;;  %4277 = vmatprep.mubr.msk.f32.mxu1 %vm4862_vm1, %v4863_v4 }
 0xb30   :  { %4628 = vmatprep.subr.bf16.mxu1 %v4861_v0 }
 0xb33   :  { %4630 = vmatpush3.bf16.msra.mxu1 %v4960_v10 }
 0xb34   :  { %4637 = vmatprep.subr.bf16.mxu1 %v4861_v0 }
 0xbeb   :  { %v1522_v27 = vpop.f32.mrb[20].mxu0 }
 0xbec   :  { %v1526_v30 = vadd.f32 %v1522_v27, %v169_v26  ;;  %v4224_v31 = vpop.f32.mrb[21].mxu0 }
 0xbee   :  { %4798 = vtanh.f32 %v1526_v30 }
 0xbf3   :  { %v1668_v45 = vpop.f32.mrb[22].mxu0 }
 0xbf4   :  { %v4246_v32 = vpop.f32.mrb[23].mxu0 }
 0xbf8   :  { %v4799_v33 = vpop.eup %4798 }
 0xbf9   :  { %v1598_v29 = vpop.f32.mrb[16].mxu1  ;;  %v1862_v34 = vmul.f32 0.5, %v4799_v33 }
 0xbfa   :  { %v1669_v36 = vadd.f32 %v1668_v45, %v1598_v29  ;;  %v4235_v37 = vpop.f32.mrb[17].mxu1 }
 0xbfb   :  { %v1814_v38 = vpop.f32.mrb[24].mxu0  ;;  %v1863_v40 = vadd.f32 0.5, %v1862_v34  ;;  %v174_v37 = vadd.f32 %v5051_v47, %v4978_v12 }
 0xbfc   :  { %v1672_v41 = vadd.f32 %v5094_v1, %v1669_v36  ;;  %v4268_v44 = vpop.f32.mrb[25].mxu0 }
 0xbfd   :  { %v1864_v50 = vsel %vm4981_vm4, %v4799_v33, %v1863_v40 }
 0xbfe   :  { %4800 = vtanh.f32 %v1672_v41  ;;  %1867 = vrot.lane.b32.xlu0 %v1864_v50, %s4864_s17  ;;  %v1865_v17 = vmul.f32 %v1864_v50, %v5273_v6 }
 0xc01   :  { %v1744_v48 = vpop.f32.mrb[18].mxu1 }
 0xc02   :  { %v1815_v52 = vadd.f32 %v1814_v38, %v1744_v48  ;;  %v4257_v59 = vpop.f32.mrb[19].mxu1 }
 0xc04   :  { %v1818_v60 = vadd.f32 %v5189_v46, %v1815_v52 }
 0xc06   :  { %4802 = vtanh.f32 %v1818_v60 }
 0xc08   :  { %v4801_v25 = vpop.eup %4800 }
 0xc09   :  { %v1841_v62 = vmul.f32 0.5, %v4801_v25 }
 0xc0b   :  { %v1842_v28 = vadd.f32 0.5, %v1841_v62 }
 0xc0d   :  { %v1843_v63 = vsel %vm4981_vm4, %v4801_v25, %v1842_v28 }
 0xc0e   :  { %1846 = vrot.lane.b32.xlu1 %v1843_v63, %s4864_s17  ;;  %v1844_v20 = vmul.f32 %v1843_v63, %v5278_v13 }
 0xc10   :  { %v4803_v2 = vpop.eup %4802 }
 0xc11   :  { %v1820_v3 = vmul.f32 0.5, %v4803_v2 }
 0xc13   :  { %v1821_v7 = vadd.f32 0.5, %v1820_v3 }
 0xc15   :  { %v1822_v8 = vsel %vm4981_vm4, %v4803_v2, %v1821_v7 }
 0xc16   :  { %1825 = vrot.lane.b32.xlu0 %v1822_v8, %s4864_s17  ;;  %v1823_v24 = vmul.f32 %v1822_v8, %v5282_v15 }
 0xc70   :  { %v1868_v9 = vpop.permute.xlu0 %1867 }
 0xc71   :  { %v1870_v11 = vmul.f32 %v1868_v9, %v1864_v50 }
 0xc73   :  { %1872 = vrot.lane.b32.xlu1 %v1870_v11, %s4865_s18 }
 0xc80   :  { %v1847_v14 = vpop.permute.xlu1 %1846 }
 0xc81   :  { %v1849_v43 = vmul.f32 %v1847_v14, %v1843_v63 }
 0xc83   :  { %1851 = vrot.lane.b32.xlu0 %v1849_v43, %s4865_s18 }
 0xc88   :  { %v1826_v16 = vpop.permute.xlu0 %1825 }
 0xc89   :  { %v1828_v53 = vmul.f32 %v1826_v16, %v1822_v8 }
 0xc8b   :  { %1830 = vrot.lane.b32.xlu1 %v1828_v53, %s4865_s18 }
 0xce5   :  { %v1873_v18 = vpop.permute.xlu1 %1872 }
 0xce6   :  { %v5342_v19 = vadd.f32 %v1873_v18, %v1865_v17 }
 0xce8   :  { %4804 = vtanh.f32 %v5342_v19 }
 0xcf2   :  { %v4805_v61 = vpop.eup %4804 }
 0xcf3   :  { %1878 = vrot.lane.b32.xlu0 %v4805_v61, %s4864_s17 }
 0xcf5   :  { %v1852_v21 = vpop.permute.xlu0 %1851 }
 0xcf6   :  { %v5347_v23 = vadd.f32 %v1852_v21, %v1844_v20 }
 0xcf8   :  { %4806 = vtanh.f32 %v5347_v23 }
 0xcfd   :  { %v1831_v26 = vpop.permute.xlu1 %1830 }
 0xcfe   :  { %v5351_v27 = vadd.f32 %v1831_v26, %v1823_v24 }
 0xd00   :  { %4808 = vtanh.f32 %v5351_v27 }
 0xd02   :  { %v4807_v6 = vpop.eup %4806 }
 0xd03   :  { %1857 = vrot.lane.b32.xlu1 %v4807_v6, %s4864_s17 }
 0xd0a   :  { %v4809_v30 = vpop.eup %4808 }
 0xd0b   :  { %1836 = vrot.lane.b32.xlu0 %v4809_v30, %s4864_s17 }
 0xd65   :  { %v1879_v31 = vpop.permute.xlu0 %1878 }
 0xd66   :  { %v1881_v13 = vmul.f32 %v1879_v31, %v1864_v50 }
 0xd68   :  { %1884 = vrot.lane.b32.xlu1 %v1881_v13, %s4865_s18 }
 0xd75   :  { %v1858_v45 = vpop.permute.xlu1 %1857 }
 0xd76   :  { %v1860_v32 = vmul.f32 %v1858_v45, %v1843_v63 }
 0xd78   :  { %1960 = vrot.lane.b32.xlu0 %v1860_v32, %s4865_s18 }
 0xd7d   :  { %v1837_v15 = vpop.permute.xlu0 %1836 }
 0xd7e   :  { %v1839_v33 = vmul.f32 %v1837_v15, %v1822_v8 }
 0xd80   :  { %2106 = vrot.lane.b32.xlu1 %v1839_v33, %s4865_s18 }
 0xdda   :  { %v1885_v29 = vpop.permute.xlu1 %1884 }
 0xddb   :  { %4278 = vmatmul.mubr.msk.f32.vlgmr.msra.gmra.mrb[20].mxu1 %vm223_vm5, %v1885_v29 }
 0xddc   :  { %4639 = vmatpush3.bf16.msra.mxu1 %v5061_v51  ;;  %4299 = vmatprep.mubr.msk.f32.mxu1 %vm4862_vm1, %v4863_v4 }
 0xddd   :  { %4640 = vmatprep.subr.bf16.mxu1 %v4861_v0 }
 0xde0   :  { %4642 = vmatpush3.bf16.msra.mxu1 %v5071_v55 }
 0xde1   :  { %4649 = vmatprep.subr.bf16.mxu1 %v4861_v0 }
 0xde3   :  { %4300 = vmatmul.mubr.msk.f32.vlgmr.msra.gmra.mrb[22].mxu1 %vm223_vm5, %v1885_v29 }
 0xde4   :  { %4651 = vmatpush3.bf16.msra.mxu1 %v5134_v42  ;;  %4321 = vmatprep.mubr.msk.f32.mxu1 %vm4862_vm1, %v4863_v4 }
 0xde5   :  { %4652 = vmatprep.subr.bf16.mxu1 %v4861_v0 }
 0xde8   :  { %4654 = vmatpush3.bf16.msra.mxu1 %v5153_v54 }
 0xde9   :  { %4661 = vmatprep.subr.bf16.mxu1 %v4861_v0 }
 0xdea   :  { %v1961_v34 = vpop.permute.xlu0 %1960 }
 0xdeb   :  { %4289 = vmatmul.mubr.msk.f32.vlgmr.msra.gmra.mrb[26].mxu0 %vm223_vm5, %v1961_v34  ;;  %4322 = vmatmul.mubr.msk.f32.vlgmr.msra.gmra.mrb[24].mxu1 %vm223_vm5, %v1961_v34 }
 0xdec   :  { %4645 = vmatpush3.bf16.msra.mxu0 %v5143_v49  ;;  %4310 = vmatprep.mubr.msk.f32.mxu0 %vm4862_vm1, %v4863_v4 }
 0xded   :  { %4646 = vmatprep.subr.bf16.mxu0 %v4861_v0  ;;  %4663 = vmatpush3.bf16.msra.mxu1 %v5008_v35 }
 0xdee   :  { %4664 = vmatprep.subr.bf16.mxu1 %v4861_v0  ;;  %4343 = vmatprep.mubr.msk.f32.mxu1 %vm4862_vm1, %v4863_v4 }
 0xdf0   :  { %4648 = vmatpush3.bf16.msra.mxu0 %v5160_v58 }
 0xdf1   :  { %4655 = vmatprep.subr.bf16.mxu0 %v4861_v0  ;;  %4666 = vmatpush3.bf16.msra.mxu1 %v5022_v39 }
 0xdf2   :  { %v2107_v36 = vpop.permute.xlu1 %2106  ;;  %4673 = vmatprep.subr.bf16.mxu1 %v4861_v0 }
 0xdf3   :  { %4311 = vmatmul.mubr.msk.f32.vlgmr.msra.gmra.mrb[28].mxu0 %vm223_vm5, %v2107_v36 }
 0xdf4   :  { %4657 = vmatpush3.bf16.msra.mxu0 %v4943_v5  ;;  %4332 = vmatprep.mubr.msk.f32.mxu0 %vm4862_vm1, %v4863_v4 }
 0xdf5   :  { %4658 = vmatprep.subr.bf16.mxu0 %v4861_v0 }
 0xdf8   :  { %4660 = vmatpush3.bf16.msra.mxu0 %v4960_v10 }
 0xdf9   :  { %4667 = vmatprep.subr.bf16.mxu0 %v4861_v0 }
 0xeae   :  { %v1954_v38 = vpop.f32.mrb[20].mxu1 }
 0xeaf   :  { %v1958_v40 = vadd.f32 %v1954_v38, %v174_v37  ;;  %v4279_v41 = vpop.f32.mrb[21].mxu1 }
 0xeb1   :  { %4810 = vtanh.f32 %v1958_v40 }
 0xeb6   :  { %v2100_v44 = vpop.f32.mrb[22].mxu1 }
 0xeb7   :  { %v4301_v50 = vpop.f32.mrb[23].mxu1 }
 0xebb   :  { %v4811_v48 = vpop.eup %4810 }
 0xebc   :  { %v2294_v52 = vmul.f32 0.5, %v4811_v48 }
 0xebe   :  { %v2030_v59 = vpop.f32.mrb[26].mxu0  ;;  %v2246_v60 = vpop.f32.mrb[24].mxu1  ;;  %v2295_v25 = vadd.f32 0.5, %v2294_v52  ;;  %v5466_v52 = vld [vmem:[%s5655_s3] ss:$0 sm:$0xff] }
 0xebf   :  { %v2101_v62 = vadd.f32 %v2100_v44, %v2030_v59  ;;  %v4290_v28 = vpop.f32.mrb[27].mxu0  ;;  %v4323_v63 = vpop.f32.mrb[25].mxu1  ;;  %v179_v59 = vadd.f32 %v5466_v52, %v5087_v57  ;;  %v5476_v57 = vld [vmem:[%s5658_s6] ss:$0 sm:$0xff] }
 0xec0   :  { %v2296_v2 = vsel %vm4981_vm4, %v4811_v48, %v2295_v25 }
 0xec1   :  { %v2104_v3 = vadd.f32 %v5094_v1, %v2101_v62  ;;  %2299 = vrot.lane.b32.xlu0 %v2296_v2, %s4864_s17  ;;  %v2297_v6 = vmul.f32 %v2296_v2, %v5342_v19 }
 0xec3   :  { %4812 = vtanh.f32 %v2104_v3 }
 0xec6   :  { %v2176_v12 = vpop.f32.mrb[28].mxu0 }
 0xec7   :  { %v2247_v47 = vadd.f32 %v2246_v60, %v2176_v12  ;;  %v4312_v7 = vpop.f32.mrb[29].mxu0 }
 0xec9   :  { %v2250_v8 = vadd.f32 %v5189_v46, %v2247_v47 }
 0xecb   :  { %4814 = vtanh.f32 %v2250_v8 }
 0xecd   :  { %v4813_v9 = vpop.eup %4812 }
 0xece   :  { %v2273_v11 = vmul.f32 0.5, %v4813_v9 }
 0xed0   :  { %v2274_v14 = vadd.f32 0.5, %v2273_v11 }
 0xed2   :  { %v2275_v43 = vsel %vm4981_vm4, %v4813_v9, %v2274_v14 }
 0xed3   :  { %2278 = vrot.lane.b32.xlu1 %v2275_v43, %s4864_s17  ;;  %v2276_v45 = vmul.f32 %v2275_v43, %v5347_v23 }
 0xed5   :  { %v4815_v16 = vpop.eup %4814 }
 0xed6   :  { %v2252_v53 = vmul.f32 0.5, %v4815_v16 }
 0xed8   :  { %v2253_v1 = vadd.f32 0.5, %v2252_v53 }
 0xeda   :  { %v2254_v17 = vsel %vm4981_vm4, %v4815_v16, %v2253_v1 }
 0xedb   :  { %2257 = vrot.lane.b32.xlu0 %v2254_v17, %s4864_s17  ;;  %v2255_v33 = vmul.f32 %v2254_v17, %v5351_v27 }
 0xf33   :  { %v2300_v18 = vpop.permute.xlu0 %2299 }
 0xf34   :  { %v2302_v61 = vmul.f32 %v2300_v18, %v2296_v2 }
 0xf36   :  { %2304 = vrot.lane.b32.xlu1 %v2302_v61, %s4865_s18 }
 0xf45   :  { %v2279_v20 = vpop.permute.xlu1 %2278 }
 0xf46   :  { %v2281_v21 = vmul.f32 %v2279_v20, %v2275_v43 }
 0xf48   :  { %2283 = vrot.lane.b32.xlu0 %v2281_v21, %s4865_s18 }
 0xf4d   :  { %v2258_v24 = vpop.permute.xlu0 %2257 }
 0xf4e   :  { %v2260_v26 = vmul.f32 %v2258_v24, %v2254_v17 }
 0xf50   :  { %2262 = vrot.lane.b32.xlu1 %v2260_v26, %s4865_s18 }
 0xfa8   :  { %v2305_v30 = vpop.permute.xlu1 %2304 }
 0xfa9   :  { %v5411_v31 = vadd.f32 %v2305_v30, %v2297_v6 }
 0xfab   :  { %4816 = vtanh.f32 %v5411_v31 }
 0xfb5   :  { %v4817_v13 = vpop.eup %4816 }
 0xfb6   :  { %2310 = vrot.lane.b32.xlu0 %v4817_v13, %s4864_s17 }
 0xfba   :  { %v2284_v32 = vpop.permute.xlu0 %2283 }
 0xfbb   :  { %v5416_v15 = vadd.f32 %v2284_v32, %v2276_v45 }
 0xfbd   :  { %4818 = vtanh.f32 %v5416_v15 }
 0xfc2   :  { %v2263_v29 = vpop.permute.xlu1 %2262 }
 0xfc3   :  { %v5420_v34 = vadd.f32 %v2263_v29, %v2255_v33 }
 0xfc5   :  { %4820 = vtanh.f32 %v5420_v34 }
 0xfc7   :  { %v4819_v19 = vpop.eup %4818 }
 0xfc8   :  { %2289 = vrot.lane.b32.xlu1 %v4819_v19, %s4864_s17 }
 0xfcf   :  { %v4821_v36 = vpop.eup %4820 }
 0xfd0   :  { %2268 = vrot.lane.b32.xlu0 %v4821_v36, %s4864_s17 }
0x1028   :  { %v2311_v37 = vpop.permute.xlu0 %2310 }
0x1029   :  { %v2313_v23 = vmul.f32 %v2311_v37, %v2296_v2 }
0x102b   :  { %2316 = vrot.lane.b32.xlu1 %v2313_v23, %s4865_s18 }
0x103a   :  { %v2290_v38 = vpop.permute.xlu1 %2289 }
0x103b   :  { %v2292_v40 = vmul.f32 %v2290_v38, %v2275_v43 }
0x103d   :  { %2392 = vrot.lane.b32.xlu0 %v2292_v40, %s4865_s18 }
0x1042   :  { %v2269_v27 = vpop.permute.xlu0 %2268 }
0x1043   :  { %v2271_v41 = vmul.f32 %v2269_v27, %v2254_v17 }
0x1045   :  { %2538 = vrot.lane.b32.xlu1 %v2271_v41, %s4865_s18 }
0x109d   :  { %v2317_v44 = vpop.permute.xlu1 %2316 }
0x109e   :  { %4333 = vmatmul.mubr.msk.f32.vlgmr.msra.gmra.mrb[30].mxu0 %vm223_vm5, %v2317_v44 }
0x109f   :  { %4669 = vmatpush3.bf16.msra.mxu0 %v5061_v51  ;;  %4354 = vmatprep.mubr.msk.f32.mxu0 %vm4862_vm1, %v4863_v4 }
0x10a0   :  { %4670 = vmatprep.subr.bf16.mxu0 %v4861_v0 }
0x10a3   :  { %4672 = vmatpush3.bf16.msra.mxu0 %v5071_v55 }
0x10a4   :  { %4679 = vmatprep.subr.bf16.mxu0 %v4861_v0 }
0x10a6   :  { %4355 = vmatmul.mubr.msk.f32.vlgmr.msra.gmra.mrb[32].mxu0 %vm223_vm5, %v2317_v44 }
0x10a7   :  { %4681 = vmatpush3.bf16.msra.mxu0 %v5134_v42  ;;  %4376 = vmatprep.mubr.msk.f32.mxu0 %vm4862_vm1, %v4863_v4 }
0x10a8   :  { %4682 = vmatprep.subr.bf16.mxu0 %v4861_v0 }
0x10ab   :  { %4684 = vmatpush3.bf16.msra.mxu0 %v5153_v54 }
0x10ac   :  { %4691 = vmatprep.subr.bf16.mxu0 %v4861_v0 }
0x10af   :  { %v2393_v50 = vpop.permute.xlu0 %2392 }
0x10b0   :  { %4344 = vmatmul.mubr.msk.f32.vlgmr.msra.gmra.mrb[26].mxu1 %vm223_vm5, %v2393_v50  ;;  %4377 = vmatmul.mubr.msk.f32.vlgmr.msra.gmra.mrb[34].mxu0 %vm223_vm5, %v2393_v50 }
0x10b1   :  { %4675 = vmatpush3.bf16.msra.mxu1 %v5143_v49  ;;  %4365 = vmatprep.mubr.msk.f32.mxu1 %vm4862_vm1, %v4863_v4 }
0x10b2   :  { %4676 = vmatprep.subr.bf16.mxu1 %v4861_v0  ;;  %4693 = vmatpush3.bf16.msra.mxu0 %v5008_v35 }
0x10b3   :  { %4694 = vmatprep.subr.bf16.mxu0 %v4861_v0  ;;  %4398 = vmatprep.mubr.msk.f32.mxu0 %vm4862_vm1, %v4863_v4 }
0x10b5   :  { %4678 = vmatpush3.bf16.msra.mxu1 %v5160_v58 }
0x10b6   :  { %4685 = vmatprep.subr.bf16.mxu1 %v4861_v0  ;;  %4696 = vmatpush3.bf16.msra.mxu0 %v5022_v39 }
0x10b7   :  { %v2539_v48 = vpop.permute.xlu1 %2538  ;;  %4703 = vmatprep.subr.bf16.mxu0 %v4861_v0 }
0x10b8   :  { %4366 = vmatmul.mubr.msk.f32.vlgmr.msra.gmra.mrb[28].mxu1 %vm223_vm5, %v2539_v48 }
0x10b9   :  { %4687 = vmatpush3.bf16.msra.mxu1 %v4943_v5  ;;  %4387 = vmatprep.mubr.msk.f32.mxu1 %vm4862_vm1, %v4863_v4 }
0x10ba   :  { %4688 = vmatprep.subr.bf16.mxu1 %v4861_v0 }
0x10bd   :  { %4690 = vmatpush3.bf16.msra.mxu1 %v4960_v10 }
0x10be   :  { %4697 = vmatprep.subr.bf16.mxu1 %v4861_v0 }
0x1171   :  { %v2386_v60 = vpop.f32.mrb[30].mxu0 }
0x1172   :  { %v2390_v25 = vadd.f32 %v2386_v60, %v179_v59  ;;  %v4334_v5 = vpop.f32.mrb[31].mxu0 }
0x1174   :  { %4822 = vtanh.f32 %v2390_v25 }
0x1179   :  { %v2532_v62 = vpop.f32.mrb[32].mxu0 }
0x117a   :  { %v4356_v28 = vpop.f32.mrb[33].mxu0 }
0x117e   :  { %v4823_v63 = vpop.eup %4822 }
0x117f   :  { %v2726_v2 = vmul.f32 0.5, %v4823_v63 }
0x1181   :  { %v2727_v3 = vadd.f32 0.5, %v2726_v2 }
0x1183   :  { %v2462_v10 = vpop.f32.mrb[26].mxu1  ;;  %v2678_v12 = vpop.f32.mrb[34].mxu0  ;;  %v2728_v47 = vsel %vm4981_vm4, %v4823_v63, %v2727_v3 }
0x1184   :  { %v2533_v7 = vadd.f32 %v2532_v62, %v2462_v10  ;;  %v4345_v8 = vpop.f32.mrb[27].mxu1  ;;  %v4378_v9 = vpop.f32.mrb[35].mxu0  ;;  %2731 = vrot.lane.b32.xlu0 %v2728_v47, %s4864_s17  ;;  %v2729_v33 = vmul.f32 %v2728_v47, %v5411_v31 }
0x1186   :  { %v2536_v11 = vadd.f32 %v5476_v57, %v2533_v7 }
0x1188   :  { %4824 = vtanh.f32 %v2536_v11 }
0x118b   :  { %v2608_v14 = vpop.f32.mrb[28].mxu1 }
0x118c   :  { %v2679_v43 = vadd.f32 %v2678_v12, %v2608_v14  ;;  %v4367_v16 = vpop.f32.mrb[29].mxu1 }
0x118d   :  { %v5551_v16 = vld [vmem:[%s5661_s9] ss:$0 sm:$0xff] }
0x118e   :  { %v2682_v53 = vadd.f32 %v5189_v46, %v2679_v43 }
0x1190   :  { %4826 = vtanh.f32 %v2682_v53 }
0x1192   :  { %v4825_v1 = vpop.eup %4824 }
0x1193   :  { %v2705_v17 = vmul.f32 0.5, %v4825_v1 }
0x1195   :  { %v2706_v18 = vadd.f32 0.5, %v2705_v17 }
0x1197   :  { %v2707_v61 = vsel %vm4981_vm4, %v4825_v1, %v2706_v18 }
0x1198   :  { %2710 = vrot.lane.b32.xlu1 %v2707_v61, %s4864_s17  ;;  %v2708_v37 = vmul.f32 %v2707_v61, %v5416_v15 }
0x119a   :  { %v4827_v20 = vpop.eup %4826 }
0x119b   :  { %v2684_v21 = vmul.f32 0.5, %v4827_v20 }
0x119d   :  { %v2685_v24 = vadd.f32 0.5, %v2684_v21 }
0x119f   :  { %v2686_v26 = vsel %vm4981_vm4, %v4827_v20, %v2685_v24 }
0x11a0   :  { %2689 = vrot.lane.b32.xlu0 %v2686_v26, %s4864_s17  ;;  %v2687_v40 = vmul.f32 %v2686_v26, %v5420_v34 }
0x11f6   :  { %v2732_v6 = vpop.permute.xlu0 %2731 }
0x11f7   :  { %v2734_v30 = vmul.f32 %v2732_v6, %v2728_v47 }
0x11f9   :  { %2736 = vrot.lane.b32.xlu1 %v2734_v30, %s4865_s18 }
0x120a   :  { %v2711_v46 = vpop.permute.xlu1 %2710 }
0x120b   :  { %v2713_v13 = vmul.f32 %v2711_v46, %v2707_v61 }
0x120d   :  { %2715 = vrot.lane.b32.xlu0 %v2713_v13, %s4865_s18 }
0x1212   :  { %v2690_v45 = vpop.permute.xlu0 %2689 }
0x1213   :  { %v2692_v32 = vmul.f32 %v2690_v45, %v2686_v26 }
0x1215   :  { %2694 = vrot.lane.b32.xlu1 %v2692_v32, %s4865_s18 }
0x126b   :  { %v2737_v29 = vpop.permute.xlu1 %2736 }
0x126c   :  { %v5490_v19 = vadd.f32 %v2737_v29, %v2729_v33 }
0x126e   :  { %4828 = vtanh.f32 %v5490_v19 }
0x1278   :  { %v4829_v36 = vpop.eup %4828 }
0x1279   :  { %2742 = vrot.lane.b32.xlu0 %v4829_v36, %s4864_s17 }
0x127f   :  { %v2716_v23 = vpop.permute.xlu0 %2715 }
0x1280   :  { %v5495_v38 = vadd.f32 %v2716_v23, %v2708_v37 }
0x1282   :  { %4830 = vtanh.f32 %v5495_v38 }
0x1287   :  { %v2695_v27 = vpop.permute.xlu1 %2694 }
0x1288   :  { %v5499_v41 = vadd.f32 %v2695_v27, %v2687_v40 }
0x128a   :  { %4832 = vtanh.f32 %v5499_v41 }
0x128c   :  { %v4831_v31 = vpop.eup %4830 }
0x128d   :  { %2721 = vrot.lane.b32.xlu1 %v4831_v31, %s4864_s17 }
0x1294   :  { %v4833_v44 = vpop.eup %4832 }
0x1295   :  { %2700 = vrot.lane.b32.xlu0 %v4833_v44, %s4864_s17 }
0x12eb   :  { %v2743_v50 = vpop.permute.xlu0 %2742 }
0x12ec   :  { %v2745_v15 = vmul.f32 %v2743_v50, %v2728_v47 }
0x12ee   :  { %2748 = vrot.lane.b32.xlu1 %v2745_v15, %s4865_s18 }
0x12ff   :  { %v2722_v48 = vpop.permute.xlu1 %2721 }
0x1300   :  { %v2724_v59 = vmul.f32 %v2722_v48, %v2707_v61 }
0x1302   :  { %2824 = vrot.lane.b32.xlu0 %v2724_v59, %s4865_s18 }
0x1307   :  { %v2701_v34 = vpop.permute.xlu0 %2700 }
0x1308   :  { %v2703_v60 = vmul.f32 %v2701_v34, %v2686_v26 }
0x130a   :  { %2970 = vrot.lane.b32.xlu1 %v2703_v60, %s4865_s18 }
0x1360   :  { %v2749_v25 = vpop.permute.xlu1 %2748 }
0x1361   :  { %4388 = vmatmul.mubr.msk.f32.vlgmr.msra.gmra.mrb[30].mxu1 %vm223_vm5, %v2749_v25 }
0x1362   :  { %4699 = vmatpush3.bf16.msra.mxu1 %v5061_v51  ;;  %4409 = vmatprep.mubr.msk.f32.mxu1 %vm4862_vm1, %v4863_v4 }
0x1363   :  { %4700 = vmatprep.subr.bf16.mxu1 %v4861_v0 }
0x1366   :  { %4702 = vmatpush3.bf16.msra.mxu1 %v5071_v55 }
0x1367   :  { %4709 = vmatprep.subr.bf16.mxu1 %v4861_v0 }
0x1369   :  { %4410 = vmatmul.mubr.msk.f32.vlgmr.msra.gmra.mrb[32].mxu1 %vm223_vm5, %v2749_v25 }
0x136a   :  { %4711 = vmatpush3.bf16.msra.mxu1 %v5134_v42  ;;  %4431 = vmatprep.mubr.msk.f32.mxu1 %vm4862_vm1, %v4863_v4 }
0x136b   :  { %4712 = vmatprep.subr.bf16.mxu1 %v4861_v0 }
0x136e   :  { %4714 = vmatpush3.bf16.msra.mxu1 %v5153_v54 }
0x136f   :  { %4721 = vmatprep.subr.bf16.mxu1 %v4861_v0 }
0x1374   :  { %v2825_v5 = vpop.permute.xlu0 %2824 }
0x1375   :  { %4399 = vmatmul.mubr.msk.f32.vlgmr.msra.gmra.mrb[36].mxu0 %vm223_vm5, %v2825_v5  ;;  %4432 = vmatmul.mubr.msk.f32.vlgmr.msra.gmra.mrb[34].mxu1 %vm223_vm5, %v2825_v5 }
0x1376   :  { %4705 = vmatpush3.bf16.msra.mxu0 %v5143_v49  ;;  %4420 = vmatprep.mubr.msk.f32.mxu0 %vm4862_vm1, %v4863_v4 }
0x1377   :  { %4706 = vmatprep.subr.bf16.mxu0 %v4861_v0  ;;  %4723 = vmatpush3.bf16.msra.mxu1 %v5061_v51  ;;  %v184_v51 = vadd.f32 %v5466_v52, %v5085_v56 }
0x1378   :  { %4724 = vmatprep.subr.bf16.mxu1 %v4861_v0  ;;  %4453 = vmatprep.mubr.msk.f32.mxu1 %vm4862_vm1, %v4863_v4 }
0x137a   :  { %4708 = vmatpush3.bf16.msra.mxu0 %v5160_v58 }
0x137b   :  { %4726 = vmatpush3.bf16.msra.mxu1 %v5071_v55  ;;  %4715 = vmatprep.subr.bf16.mxu0 %v4861_v0 }
0x137c   :  { %v2971_v62 = vpop.permute.xlu1 %2970  ;;  %4733 = vmatprep.subr.bf16.mxu1 %v4861_v0 }
0x137d   :  { %4421 = vmatmul.mubr.msk.f32.vlgmr.msra.gmra.mrb[38].mxu0 %vm223_vm5, %v2971_v62 }
0x137e   :  { %4717 = vmatpush3.bf16.msra.mxu0 %v5008_v35  ;;  %4442 = vmatprep.mubr.msk.f32.mxu0 %vm4862_vm1, %v4863_v4 }
0x137f   :  { %4718 = vmatprep.subr.bf16.mxu0 %v4861_v0 }
0x1382   :  { %4720 = vmatpush3.bf16.msra.mxu0 %v5022_v39 }
0x1383   :  { %4727 = vmatprep.subr.bf16.mxu0 %v4861_v0 }
0x1434   :  { %v2818_v55 = vpop.f32.mrb[30].mxu1 }
0x1435   :  { %v2822_v28 = vadd.f32 %v2818_v55, %v184_v51  ;;  %v4389_v63 = vpop.f32.mrb[31].mxu1 }
0x1437   :  { %4834 = vtanh.f32 %v2822_v28 }
0x143c   :  { %v2964_v2 = vpop.f32.mrb[32].mxu1 }
0x143d   :  { %v4411_v3 = vpop.f32.mrb[33].mxu1 }
0x1441   :  { %v4835_v10 = vpop.eup %4834 }
0x1442   :  { %v3158_v35 = vmul.f32 0.5, %v4835_v10 }
0x1444   :  { %v3159_v12 = vadd.f32 0.5, %v3158_v35 }
0x1446   :  { %v3160_v47 = vsel %vm4981_vm4, %v4835_v10, %v3159_v12 }
0x1447   :  { %3163 = vrot.lane.b32.xlu1 %v3160_v47, %s4864_s17  ;;  %v3161_v33 = vmul.f32 %v3160_v47, %v5490_v19 }
0x1448   :  { %v2894_v39 = vpop.f32.mrb[36].mxu0  ;;  %v3110_v7 = vpop.f32.mrb[34].mxu1 }
0x1449   :  { %v2965_v8 = vadd.f32 %v2964_v2, %v2894_v39  ;;  %v4400_v9 = vpop.f32.mrb[37].mxu0  ;;  %v4433_v11 = vpop.f32.mrb[35].mxu1 }
0x144b   :  { %v2968_v56 = vadd.f32 %v5476_v57, %v2965_v8 }
0x144d   :  { %4836 = vtanh.f32 %v2968_v56 }
0x1450   :  { %v3040_v52 = vpop.f32.mrb[38].mxu0 }
0x1451   :  { %v3111_v14 = vadd.f32 %v3110_v7, %v3040_v52  ;;  %v4422_v43 = vpop.f32.mrb[39].mxu0 }
0x1453   :  { %v3114_v53 = vadd.f32 %v5551_v16, %v3111_v14 }
0x1455   :  { %4838 = vtanh.f32 %v3114_v53 }
0x1457   :  { %v4837_v1 = vpop.eup %4836 }
0x1458   :  { %v3137_v17 = vmul.f32 0.5, %v4837_v1 }
0x145a   :  { %v3138_v18 = vadd.f32 0.5, %v3137_v17 }
0x145c   :  { %v3139_v61 = vsel %vm4981_vm4, %v4837_v1, %v3138_v18 }
0x145d   :  { %3142 = vrot.lane.b32.xlu0 %v3139_v61, %s4864_s17  ;;  %v3140_v23 = vmul.f32 %v3139_v61, %v5495_v38 }
0x145f   :  { %v4839_v20 = vpop.eup %4838 }
0x1460   :  { %v3116_v21 = vmul.f32 0.5, %v4839_v20 }
0x1462   :  { %v3117_v24 = vadd.f32 0.5, %v3116_v21 }
0x1464   :  { %v3118_v26 = vsel %vm4981_vm4, %v4839_v20, %v3117_v24 }
0x1465   :  { %3121 = vrot.lane.b32.xlu0 %v3118_v26, %s4864_s17  ;;  %v3119_v31 = vmul.f32 %v3118_v26, %v5499_v41 }
0x14b9   :  { %v3164_v6 = vpop.permute.xlu1 %3163 }
0x14ba   :  { %v3166_v30 = vmul.f32 %v3164_v6, %v3160_v47 }
0x14bc   :  { %3168 = vrot.lane.b32.xlu0 %v3166_v30, %s4865_s18 }
0x14cf   :  { %v3143_v46 = vpop.permute.xlu0 %3142 }
0x14d0   :  { %v3145_v13 = vmul.f32 %v3143_v46, %v3139_v61 }
0x14d2   :  { %3147 = vrot.lane.b32.xlu1 %v3145_v13, %s4865_s18 }
0x14d7   :  { %v3122_v45 = vpop.permute.xlu0 %3121 }
0x14d8   :  { %v3124_v32 = vmul.f32 %v3122_v45, %v3118_v26 }
0x14da   :  { %3126 = vrot.lane.b32.xlu1 %v3124_v32, %s4865_s18 }
0x152e   :  { %v3169_v29 = vpop.permute.xlu0 %3168 }
0x152f   :  { %v3171_v36 = vadd.f32 %v3169_v29, %v3161_v33 }
0x1531   :  { %4840 = vtanh.f32 %v3171_v36 }
0x153b   :  { %v4841_v37 = vpop.eup %4840 }
0x153c   :  { %3174 = vrot.lane.b32.xlu1 %v4841_v37, %s4864_s17 }
0x1544   :  { %v3148_v40 = vpop.permute.xlu1 %3147 }
0x1545   :  { %v5566_v27 = vadd.f32 %v3148_v40, %v3140_v23 }
0x1547   :  { %4842 = vtanh.f32 %v5566_v27 }
0x154c   :  { %v3127_v44 = vpop.permute.xlu1 %3126 }
0x154d   :  { %v5570_v50 = vadd.f32 %v3127_v44, %v3119_v31 }
0x154f   :  { %4844 = vtanh.f32 %v5570_v50 }
0x1551   :  { %v4843_v19 = vpop.eup %4842 }
0x1552   :  { %3153 = vrot.lane.b32.xlu0 %v4843_v19, %s4864_s17 }
0x1559   :  { %v4845_v15 = vpop.eup %4844 }
0x155a   :  { %3132 = vrot.lane.b32.xlu0 %v4845_v15, %s4864_s17 }
0x15ae   :  { %v3175_v48 = vpop.permute.xlu1 %3174 }
0x15af   :  { %v3177_v38 = vmul.f32 %v3175_v48, %v3160_v47 }
0x15b1   :  { %3254 = vrot.lane.b32.xlu0 %v3177_v38, %s4865_s18  ;;  %v3691_v38 = vld [vmem:[%s5662_s10 + $0x8] sm:$0xff] }
0x15c4   :  { %v3154_v59 = vpop.permute.xlu0 %3153 }
0x15c5   :  { %v3156_v34 = vmul.f32 %v3154_v59, %v3139_v61 }
0x15c7   :  { %3179 = vrot.lane.b32.xlu1 %v3156_v34, %s4865_s18  ;;  %v3693_v34 = vld [vmem:[%s5662_s10 + $0x18] sm:$0xff] }
0x15cc   :  { %v3133_v41 = vpop.permute.xlu0 %3132 }
0x15cd   :  { %v3135_v60 = vmul.f32 %v3133_v41, %v3118_v26  ;;  %v4755_v41 = vpack.c.bf16 %v3693_v34, %v3692_v22 }
0x15cf   :  { %3330 = vrot.lane.b32.xlu1 %v3135_v60, %s4865_s18 }
0x1623   :  { %v3255_v25 = vpop.permute.xlu0 %3254 }
0x1624   :  { %4454 = vmatmul.mubr.msk.f32.vlgmr.msra.gmra.mrb[36].mxu1 %vm223_vm5, %v3255_v25 }
0x1625   :  { %4735 = vmatpush3.bf16.msra.mxu1 %v5134_v42  ;;  %4475 = vmatprep.mubr.msk.f32.mxu1 %vm4862_vm1, %v4863_v4 }
0x1626   :  { %4736 = vmatprep.subr.bf16.mxu1 %v4861_v0 }
0x1629   :  { %4738 = vmatpush3.bf16.msra.mxu1 %v5153_v54 }
0x162a   :  { %4745 = vmatprep.subr.bf16.mxu1 %v4861_v0 }
0x1639   :  { %v3180_v5 = vpop.permute.xlu1 %3179 }
0x163a   :  { %4443 = vmatmul.mubr.msk.f32.vlgmr.msra.gmra.mrb[40].mxu0 %vm223_vm5, %v3180_v5  ;;  %4476 = vmatmul.mubr.msk.f32.vlgmr.msra.gmra.mrb[38].mxu1 %vm223_vm5, %v3180_v5 }
0x163b   :  { %4729 = vmatpush3.bf16.msra.mxu0 %v5143_v49  ;;  %4464 = vmatprep.mubr.msk.f32.mxu0 %vm4862_vm1, %v4863_v4 }
0x163c   :  { %4730 = vmatprep.subr.bf16.mxu0 %v4861_v0  ;;  %4747 = vmatpush3.bf16.msra.mxu1 %v5134_v42 }
0x163d   :  { %4748 = vmatprep.subr.bf16.mxu1 %v4861_v0  ;;  %4497 = vmatprep.mubr.msk.f32.mxu1 %vm4862_vm1, %v4863_v4 }
0x163f   :  { %4732 = vmatpush3.bf16.msra.mxu0 %v5160_v58 }
0x1640   :  { %4750 = vmatpush3.bf16.msra.mxu1 %v5153_v54  ;;  %4739 = vmatprep.subr.bf16.mxu0 %v4861_v0 }
0x1641   :  { %v3331_v62 = vpop.permute.xlu1 %3330 }
0x1642   :  { %4465 = vmatmul.mubr.msk.f32.vlgmr.msra.gmra.mrb[42].mxu0 %vm223_vm5, %v3331_v62 }
0x1643   :  { %4741 = vmatpush3.bf16.msra.mxu0 %v5143_v49  ;;  %4486 = vmatprep.mubr.msk.f32.mxu0 %vm4862_vm1, %v4863_v4 }
0x1644   :  { %4742 = vmatprep.subr.bf16.mxu0 %v4861_v0 }
0x1647   :  { %4744 = vmatpush3.bf16.msra.mxu0 %v5160_v58 }
0x1648   :  { %4751 = vmatprep.subr.bf16.mxu0 %v4861_v0 }
0x16f7   :  { %v3324_v42 = vpop.f32.mrb[36].mxu1 }
0x16f8   :  { %v4455_v51 = vpop.f32.mrb[37].mxu1 }
0x16f9   :  { %v3830_v51 = vld [vmem:[%s5663_s11] ss:$0 sm:$0xff] }
0x170d   :  { %v3249_v55 = vpop.f32.mrb[40].mxu0  ;;  %v3470_v54 = vpop.f32.mrb[38].mxu1 }
0x170e   :  { %v3325_v28 = vadd.f32 %v3324_v42, %v3249_v55  ;;  %v4444_v63 = vpop.f32.mrb[41].mxu0  ;;  %v4477_v2 = vpop.f32.mrb[39].mxu1 }
0x1710   :  { %v3328_v3 = vadd.f32 %v5476_v57, %v3325_v28 }
0x1712   :  { %4846 = vtanh.f32 %v3328_v3 }
0x1715   :  { %v3400_v49 = vpop.f32.mrb[42].mxu0 }
0x1716   :  { %v3471_v10 = vadd.f32 %v3470_v54, %v3400_v49  ;;  %v4466_v35 = vpop.f32.mrb[43].mxu0 }
0x1718   :  { %v3474_v12 = vadd.f32 %v5551_v16, %v3471_v10 }
0x171a   :  { %4848 = vtanh.f32 %v3474_v12 }
0x171c   :  { %v4847_v47 = vpop.eup %4846 }
0x171d   :  { %v3497_v58 = vmul.f32 0.5, %v4847_v47 }
0x171f   :  { %v3498_v39 = vadd.f32 0.5, %v3497_v58 }
0x1721   :  { %v3499_v7 = vsel %vm4981_vm4, %v4847_v47, %v3498_v39 }
0x1722   :  { %3502 = vrot.lane.b32.xlu1 %v3499_v7, %s4864_s17  ;;  %v3500_v53 = vmul.f32 %v3499_v7, %v5566_v27 }
0x1724   :  { %v4849_v8 = vpop.eup %4848 }
0x1725   :  { %v3476_v9 = vmul.f32 0.5, %v4849_v8 }
0x1727   :  { %v3477_v11 = vadd.f32 0.5, %v3476_v9 }
0x1729   :  { %v3478_v57 = vsel %vm4981_vm4, %v4849_v8, %v3477_v11 }
0x172a   :  { %3481 = vrot.lane.b32.xlu0 %v3478_v57, %s4864_s17  ;;  %v3479_v18 = vmul.f32 %v3478_v57, %v5570_v50 }
0x1794   :  { %v3503_v56 = vpop.permute.xlu1 %3502 }
0x1795   :  { %v3505_v52 = vmul.f32 %v3503_v56, %v3499_v7 }
0x1797   :  { %3507 = vrot.lane.b32.xlu1 %v3505_v52, %s4865_s18 }
0x179c   :  { %v3482_v14 = vpop.permute.xlu0 %3481 }
0x179d   :  { %v3484_v43 = vmul.f32 %v3482_v14, %v3478_v57 }
0x179f   :  { %3486 = vrot.lane.b32.xlu0 %v3484_v43, %s4865_s18 }
0x1809   :  { %v3508_v1 = vpop.permute.xlu1 %3507 }
0x180a   :  { %v3510_v17 = vadd.f32 %v3508_v1, %v3500_v53 }
0x180c   :  { %4850 = vtanh.f32 %v3510_v17 }
0x1811   :  { %v3487_v61 = vpop.permute.xlu0 %3486 }
0x1812   :  { %v3489_v20 = vadd.f32 %v3487_v61, %v3479_v18 }
0x1814   :  { %4852 = vtanh.f32 %v3489_v20 }
0x1816   :  { %v4851_v21 = vpop.eup %4850 }
0x1817   :  { %3513 = vrot.lane.b32.xlu1 %v4851_v21, %s4864_s17 }
0x181e   :  { %v4853_v24 = vpop.eup %4852 }
0x181f   :  { %3492 = vrot.lane.b32.xlu0 %v4853_v24, %s4864_s17 }
0x1889   :  { %v3514_v26 = vpop.permute.xlu1 %3513 }
0x188a   :  { %v3516_v6 = vmul.f32 %v3514_v26, %v3499_v7 }
0x188c   :  { %3593 = vrot.lane.b32.xlu1 %v3516_v6, %s4865_s18 }
0x1891   :  { %v3493_v30 = vpop.permute.xlu0 %3492 }
0x1892   :  { %v3495_v46 = vmul.f32 %v3493_v30, %v3478_v57 }
0x1894   :  { %3518 = vrot.lane.b32.xlu0 %v3495_v46, %s4865_s18 }
0x18fe   :  { %v3594_v13 = vpop.permute.xlu1 %3593 }
0x18ff   :  { %4498 = vmatmul.mubr.msk.f32.vlgmr.msra.gmra.mrb[40].mxu1 %vm223_vm5, %v3594_v13 }
0x1906   :  { %v3519_v45 = vpop.permute.xlu0 %3518 }
0x1907   :  { %4487 = vmatmul.mubr.msk.f32.vlgmr.msra.gmra.mrb[44].mxu0 %vm223_vm5, %v3519_v45 }
0x1908   :  { %4508 = vmatprep.mubr.msk.f32.mxu0 %vm4862_vm1, %v4863_v4 }
0x19d2   :  { %v3663_v32 = vpop.f32.mrb[40].mxu1 }
0x19d3   :  { %v4499_v33 = vpop.f32.mrb[41].mxu1 }
0x19da   :  { %v3588_v29 = vpop.f32.mrb[44].mxu0 }
0x19db   :  { %v3664_v36 = vadd.f32 %v3663_v32, %v3588_v29  ;;  %v4488_v37 = vpop.f32.mrb[45].mxu0 }
0x19dd   :  { %v3667_v23 = vadd.f32 %v5551_v16, %v3664_v36  ;;  %v3690_v16 = vld [vmem:[%s5662_s10] sm:$0xff] }
0x19de   :  { %v4752_v59 = vpack.c.bf16 %v3691_v38, %v3690_v16 }
0x19df   :  { %4854 = vtanh.f32 %v3667_v23 }
0x19e0   :  { %4753 = vmatpush3.bf16.msra.mxu0 %v4752_v59 }
0x19e1   :  { %4754 = vmatprep.subr.bf16.mxu0 %v4861_v0 }
0x19e4   :  { %4756 = vmatpush3.bf16.msra.mxu0 %v4755_v41 }
0x19e9   :  { %v4855_v40 = vpop.eup %4854 }
0x19ea   :  { %v3669_v27 = vmul.f32 0.5, %v4855_v40 }
0x19ec   :  { %v3670_v31 = vadd.f32 0.5, %v3669_v27 }
0x19ee   :  { %v3671_v44 = vsel %vm4981_vm4, %v4855_v40, %v3670_v31 }
0x19ef   :  { %3674 = vrot.lane.b32.xlu0 %v3671_v44, %s4864_s17  ;;  %v3672_v4 = vmul.f32 %v3671_v44, %v3489_v20 }
0x1a61   :  { %v3675_v50 = vpop.permute.xlu0 %3674 }
0x1a62   :  { %v3677_v19 = vmul.f32 %v3675_v50, %v3671_v44 }
0x1a64   :  { %3679 = vrot.lane.b32.xlu1 %v3677_v19, %s4865_s18 }
0x1ad6   :  { %v3680_v15 = vpop.permute.xlu1 %3679 }
0x1ad7   :  { %v3682_v48 = vadd.f32 %v3680_v15, %v3672_v4 }
0x1ad9   :  { %4856 = vtanh.f32 %v3682_v48 }
0x1ae3   :  { %v4857_v60 = vpop.eup %4856 }
0x1ae4   :  { %3685 = vrot.lane.b32.xlu0 %v4857_v60, %s4864_s17 }
0x1b56   :  { %v3686_v25 = vpop.permute.xlu0 %3685 }
0x1b57   :  { %v3688_v5 = vmul.f32 %v3686_v25, %v3671_v44 }
0x1b59   :  { %v3689_v62 = vmax.f32 %v3688_v5, 0.0 }
0x1b5b   :  { %3702 = vrot.lane.b32.xlu1 %v3689_v62, %s4865_s18 }
0x1bcd   :  { %v3703_v42 = vpop.permute.xlu1 %3702 }
0x1bce   :  { %4509 = vmatmul.mubr.msk.f32.vlgmr.msra.gmra.mrb[46].mxu0 %vm223_vm5, %v3703_v42 }
0x1ca1   :  { %v3772_v55 = vpop.f32.mrb[46].mxu0 }
0x1ca2   :  { %v3773_v54 = vadd.f32 %v3830_v51, %v3772_v55  ;;  %v4510_v0 = vpop.f32.mrb[47].mxu0 }
0x1ca4   :  { %3777 = vst.msk [vmem:[%s5664_s12] sm:$0xff] %vm3776_vm6, %v3773_v54 }

</bundles_post_ra>
